<compile_context>
chip_gen: v5e
topology: v5e:2x2
jax: 0.10.0
libtpu: 0.0.40
codegen_flags: <defaults>
</compile_context>

<pallas_src>
import functools

import jax
import jax.numpy as jnp
from jax import lax
from jax.experimental import pallas as pl
from jax.experimental.pallas import tpu as pltpu


_SQRT1_2 = 0.7071067811865476


def _gelu_exact(x):
    # exact (erf) GELU, matching torch.nn.functional.gelu default
    return 0.5 * x * (1.0 + lax.erf(x * _SQRT1_2))


def _sigmoid_tanh(x):
    # sigmoid(x) == 0.5 * (1 + tanh(x / 2)); exact identity, single EUP push.
    return 0.5 * (1.0 + jnp.tanh(0.5 * x))


def _round_up(x, m):
    return ((x + m - 1) // m) * m


def _vmem_limit(est_bytes, floor=32 << 20, cap=64 << 20):
    # Explicit scoped-VMEM budget: raise above the v5e 16 MiB default, stay
    # within v7x's 64 MiB physical VMEM.
    return int(min(max(int(est_bytes), floor), cap))


# ----------------------------------------------------------------------------
# Kernel 1 (fused): input projection + LSTM recurrence, time-major.
#   inputs : X_tm (T, B, H), W_ih^T (H, 4H), W_hh^T (H, 4H), bias (1, 4H)
#   output : Xh_tm (T, B, H)
# grid = (B-chunks [parallel], T-chunks [arbitrary]); h/c persist in VMEM
# scratch across time chunks and are reset at program_id(1) == 0.
# PyTorch gate order: i, f, g, o.
# ----------------------------------------------------------------------------
def lstm_forward(x_tm, w_ih_t, w_hh_t, bias, *, time_tile=32, batch_tile=64):
    T, B, H = x_tm.shape
    TT = T if T <= time_tile else time_tile
    if B <= 8:
        TB = B                                   # block == full batch dim
    else:
        # >= 2 batch chunks so the "parallel" axis shards across both
        # TensorCores on v7x; TB is a multiple of 8 (sublane tile).
        TB = min(batch_tile, _round_up(pl.cdiv(B, 2), 8))
    nb = pl.cdiv(B, TB)
    nt = pl.cdiv(T, TT)
    guard_tail = (T % TT) != 0

    def kernel(x_ref, wih_ref, whh_ref, b_ref, out_ref, gates_sc, h_sc, c_sc):
        # h/c carry lives in scratch; the time axis MUST stay the innermost,
        # sequentially-iterated ("arbitrary") grid axis for this to be valid.
        @pl.when(pl.program_id(1) == 0)
        def _():
            h_sc[...] = jnp.zeros_like(h_sc)
            c_sc[...] = jnp.zeros_like(c_sc)

        # Block prologue: hoist x @ W_ih (+ bias) for all TT timesteps of this
        # block into one MXU-friendly matmul; the serial loop below only does
        # h @ W_hh per step.  Gates stay in VMEM (no HBM round trip).
        x2d = x_ref[...].reshape(TT * TB, H)
        gates_sc[...] = (
            jnp.dot(x2d, wih_ref[...], preferred_element_type=jnp.float32)
            + b_ref[...])

        t_base = pl.program_id(1) * TT

        def one_step(tt):
            row0 = pl.multiple_of(tt * TB, TB)
            g_t = gates_sc[pl.ds(row0, TB), :]               # dense (TB, 4H)
            gates = g_t + jnp.dot(h_sc[...], whh_ref[...],
                                  preferred_element_type=jnp.float32)
            i_g = _sigmoid_tanh(gates[:, 0 * H:1 * H])
            f_g = _sigmoid_tanh(gates[:, 1 * H:2 * H])
            g_g = jnp.tanh(gates[:, 2 * H:3 * H])
            o_g = _sigmoid_tanh(gates[:, 3 * H:4 * H])
            c_new = f_g * c_sc[...] + i_g * g_g
            h_new = o_g * jnp.tanh(c_new)
            c_sc[...] = c_new
            h_sc[...] = h_new
            # dense per-timestep slab store (time-major layout)
            out_ref[pl.ds(tt, 1), :, :] = h_new[None, :, :].astype(out_ref.dtype)

        def body(tt, carry):
            if guard_tail:
                @pl.when(t_base + tt < T)
                def _():
                    one_step(tt)
            else:
                one_step(tt)
            return carry

        lax.fori_loop(0, TT, body, 0, unroll=(True if TT <= 8 else 2))

    flops = 4 * B * T * H * (4 * H) + 12 * B * T * H
    transcendentals = 5 * B * T * H
    bytes_accessed = 4 * (B * T * H            # X read
                          + B * T * H          # Xh writeback
                          + 2 * H * 4 * H      # weights
                          + 4 * H)             # bias
    vmem_est = (4 * (2 * TT * TB * H)          # x block (double buffered)
                + 4 * (2 * TT * TB * H)        # out block (double buffered)
                + 4 * (TT * TB * 4 * H)        # gates scratch
                + 4 * 2 * (2 * H * 4 * H + 4 * H)   # weights + bias
                + 4 * 2 * (TB * H)             # h, c scratch
                + (2 << 20))

    return pl.pallas_call(
        kernel,
        out_shape=jax.ShapeDtypeStruct((T, B, H), x_tm.dtype),
        grid_spec=pltpu.PrefetchScalarGridSpec(
            num_scalar_prefetch=0,
            grid=(nb, nt),
            in_specs=[
                pl.BlockSpec((TT, TB, H), lambda b, t: (t, b, 0)),
                pl.BlockSpec((H, 4 * H), lambda b, t: (0, 0)),
                pl.BlockSpec((H, 4 * H), lambda b, t: (0, 0)),
                pl.BlockSpec((1, 4 * H), lambda b, t: (0, 0)),
            ],
            out_specs=pl.BlockSpec((TT, TB, H), lambda b, t: (t, b, 0)),
            scratch_shapes=[
                pltpu.VMEM((TT * TB, 4 * H), jnp.float32),   # pregates
                pltpu.VMEM((TB, H), jnp.float32),            # h carry
                pltpu.VMEM((TB, H), jnp.float32),            # c carry
            ],
        ),
        compiler_params=pltpu.CompilerParams(
            dimension_semantics=("parallel", "arbitrary"),
            vmem_limit_bytes=_vmem_limit(vmem_est)),
        cost_estimate=pl.CostEstimate(
            flops=flops,
            transcendentals=transcendentals,
            bytes_accessed=bytes_accessed),
    )(x_tm, w_ih_t, w_hh_t, bias)


# ----------------------------------------------------------------------------
# Kernel 2: fused heads.  One wide (H, K*H) projection matmul per row tile,
# one GELU, then K small (H, H) out matmuls.  Row-parallel, fully pipelined.
# ----------------------------------------------------------------------------
def heads_forward(x_flat, wp_cat, bp_cat, wo, bo, *, row_tile=512):
    N, H = x_flat.shape
    K = wo.shape[0]
    KH = wp_cat.shape[1]
    TN = N if N <= row_tile else row_tile        # row_tile is a multiple of 8

    def kernel(x_ref, wp_ref, bp_ref, wo_ref, bo_ref, out_ref):
        x = x_ref[...]
        pre = jnp.dot(x, wp_ref[...], preferred_element_type=jnp.float32) + bp_ref[...]
        g = _gelu_exact(pre)                     # (TN, K*H), single GELU pass
        for k in range(K):                       # K is 2 or 3 (static)
            gk = g[:, k * H:(k + 1) * H]
            yk = jnp.dot(gk, wo_ref[k], preferred_element_type=jnp.float32) + bo_ref[k]
            out_ref[k] = yk.astype(out_ref.dtype)

    vmem_est = (4 * 2 * TN * H                   # x block
                + 4 * 2 * K * TN * H             # out block
                + 4 * 2 * (H * KH + KH + K * H * H + K * H)   # weights/bias
                + (2 << 20))

    return pl.pallas_call(
        kernel,
        out_shape=jax.ShapeDtypeStruct((K, N, H), x_flat.dtype),
        grid_spec=pltpu.PrefetchScalarGridSpec(
            num_scalar_prefetch=0,
            grid=(pl.cdiv(N, TN),),
            in_specs=[
                pl.BlockSpec((TN, H), lambda i: (i, 0)),
                pl.BlockSpec((H, KH), lambda i: (0, 0)),
                pl.BlockSpec((1, KH), lambda i: (0, 0)),
                pl.BlockSpec((K, H, H), lambda i: (0, 0, 0)),
                pl.BlockSpec((K, 1, H), lambda i: (0, 0, 0)),
            ],
            out_specs=pl.BlockSpec((K, TN, H), lambda i: (0, i, 0)),
        ),
        compiler_params=pltpu.CompilerParams(
            dimension_semantics=("parallel",),
            vmem_limit_bytes=_vmem_limit(vmem_est)),
        cost_estimate=pl.CostEstimate(
            flops=4 * N * K * H * H,
            transcendentals=N * K * H,
            bytes_accessed=4 * (N * H + K * N * H + H * KH + K * H * H)),
    )(x_flat, wp_cat, bp_cat, wo, bo)


# ----------------------------------------------------------------------------
# Module wrapper
# ----------------------------------------------------------------------------
def init_params(key, hidden_size):
    H = hidden_size
    ks = jax.random.split(key, 14)
    scale = 0.1
    p = {
        # nn.LSTM params (PyTorch shapes: (4H, H) / (4H,)); stored transposed.
        "w_ih_t": scale * jax.random.normal(ks[0], (H, 4 * H), jnp.float32),
        "w_hh_t": scale * jax.random.normal(ks[1], (H, 4 * H), jnp.float32),
        "b_ih": scale * jax.random.normal(ks[2], (1, 4 * H), jnp.float32),
        "b_hh": scale * jax.random.normal(ks[3], (1, 4 * H), jnp.float32),
        # GehringLinear == Linear; store W^T (in, out) + bias (1, out).
        "proj_b_w": scale * jax.random.normal(ks[4], (H, H), jnp.float32),
        "proj_b_b": scale * jax.random.normal(ks[5], (1, H), jnp.float32),
        "out_b_w": scale * jax.random.normal(ks[6], (H, H), jnp.float32),
        "out_b_b": scale * jax.random.normal(ks[7], (1, H), jnp.float32),
        "proj_f_w": scale * jax.random.normal(ks[8], (H, H), jnp.float32),
        "proj_f_b": scale * jax.random.normal(ks[9], (1, H), jnp.float32),
        "out_f_w": scale * jax.random.normal(ks[10], (H, H), jnp.float32),
        "out_f_b": scale * jax.random.normal(ks[11], (1, H), jnp.float32),
        # variant == 'separate' extra head
        "proj_h_w": scale * jax.random.normal(ks[12], (H, H), jnp.float32),
        "proj_h_b": jnp.zeros((1, H), jnp.float32),
        "out_h_w": scale * jax.random.normal(ks[13], (H, H), jnp.float32),
        "out_h_b": jnp.zeros((1, H), jnp.float32),
    }
    return p


@functools.partial(jax.jit, static_argnames=("variant",))
def lstm_layer_forward(params, X, variant="separate"):
    # X: (B, T, H), batch_first.  Dropout is identity in eval mode.
    B, T, H = X.shape

    # 1+2) fused input projection + serial recurrence, time-major layout.
    lstm_bias = params["b_ih"] + params["b_hh"]
    X_tm = jnp.transpose(X, (1, 0, 2))                       # (T, B, H)
    Xh_tm = lstm_forward(X_tm, params["w_ih_t"], params["w_hh_t"], lstm_bias)
    Xh = jnp.transpose(Xh_tm, (1, 0, 2))                     # (B, T, H)
    flat = Xh.reshape(B * T, H)

    # 3) fused proj -> GELU -> out heads (wide first matmul over all heads).
    names = ("h", "b", "f") if variant == "separate" else ("b", "f")
    wp_cat = jnp.concatenate([params[f"proj_{n}_w"] for n in names], axis=1)
    bp_cat = jnp.concatenate([params[f"proj_{n}_b"] for n in names], axis=1)
    wo = jnp.stack([params[f"out_{n}_w"] for n in names])
    bo = jnp.stack([params[f"out_{n}_b"] for n in names])
    outs = heads_forward(flat, wp_cat, bp_cat, wo, bo)       # (K, B*T, H)

    if variant == "separate":
        Xout = outs[0].reshape(B, T, H)
        b = outs[1].reshape(B, T, H)
        f = outs[2].reshape(B, T, H)
    else:
        Xout = Xh
        b = outs[0].reshape(B, T, H)
        f = outs[1].reshape(B, T, H)
    return Xout, b, f


# ----------------------------------------------------------------------------
# Pure-JAX reference (mirrors the PyTorch forward) for validation.
# ----------------------------------------------------------------------------
def reference_forward(params, X, variant="separate"):
    B, T, H = X.shape
    bias = params["b_ih"] + params["b_hh"]

    def step(carry, x_t):
        h, c = carry
        gates = x_t @ params["w_ih_t"] + h @ params["w_hh_t"] + bias
        i = jax.nn.sigmoid(gates[:, 0 * H:1 * H])
        f = jax.nn.sigmoid(gates[:, 1 * H:2 * H])
        g = jnp.tanh(gates[:, 2 * H:3 * H])
        o = jax.nn.sigmoid(gates[:, 3 * H:4 * H])
        c = f * c + i * g
        h = o * jnp.tanh(c)
        return (h, c), h

    h0 = jnp.zeros((B, H), jnp.float32)
    (_, _), hs = lax.scan(step, (h0, h0), jnp.transpose(X, (1, 0, 2)))
    Xh = jnp.transpose(hs, (1, 0, 2))

    def head(x, wp, bp, wo, bo):
        return _gelu_exact(x @ wp + bp) @ wo + bo

    b = head(Xh, params["proj_b_w"], params["proj_b_b"],
             params["out_b_w"], params["out_b_b"])
    f = head(Xh, params["proj_f_w"], params["proj_f_b"],
             params["out_f_w"], params["out_f_b"])
    if variant == "separate":
        Xout = head(Xh, params["proj_h_w"], params["proj_h_b"],
                    params["out_h_w"], params["out_h_b"])
    else:
        Xout = Xh
    return Xout, b, f


if __name__ == "__main__":
    B, T, H = 2, 8, 32
    key = jax.random.PRNGKey(0)
    k_param, k_x = jax.random.split(key)
    params = init_params(k_param, H)
    X = jax.random.normal(k_x, (B, T, H), jnp.float32)

    out = lstm_layer_forward(params, X, variant="separate")
    out = jax.block_until_ready(out)

    ref = reference_forward(params, X, variant="separate")
    for got, want in zip(out, ref):
        assert got.shape == want.shape
        err = float(jnp.max(jnp.abs(got - want)))
        assert err < 2e-4, err

    print("KERNEL_OK")
</pallas_src>

<mosaic_0001>
module attributes {stable_mosaic.version = 11 : i64} {
  func.func @kernel(%arg0: i32, %arg1: i32, %arg2: memref<8x2x32xf32, #tpu.memory_space<vmem>>, %arg3: memref<32x128xf32, #tpu.memory_space<vmem>>, %arg4: memref<32x128xf32, #tpu.memory_space<vmem>>, %arg5: memref<1x128xf32, #tpu.memory_space<vmem>>, %arg6: memref<8x2x32xf32, #tpu.memory_space<vmem>>, %arg7: memref<16x128xf32, #tpu.memory_space<vmem>>, %arg8: memref<2x32xf32, #tpu.memory_space<vmem>>, %arg9: memref<2x32xf32, #tpu.memory_space<vmem>>) attributes {dimension_semantics = [#tpu.dimension_semantics<parallel>, #tpu.dimension_semantics<arbitrary>], iteration_bounds = array<i64: 1, 1>, scalar_prefetch = 0 : i64, scratch_operands = 3 : i64, tpu.core_type = #tpu.core_type<tc>, window_params = [{transform_indices = @transform_0, window_bounds = array<i64: 8, 2, 32>}, {pipeline_mode = #tpu.pipeline_mode<synchronous>, transform_indices = @transform_1, window_bounds = array<i64: 32, 128>}, {pipeline_mode = #tpu.pipeline_mode<synchronous>, transform_indices = @transform_2, window_bounds = array<i64: 32, 128>}, {pipeline_mode = #tpu.pipeline_mode<synchronous>, transform_indices = @transform_3, window_bounds = array<i64: 1, 128>}, {transform_indices = @transform_4, window_bounds = array<i64: 8, 2, 32>}]} {
    %c0_i32 = arith.constant 0 : i32
    %0 = arith.cmpi eq, %arg1, %c0_i32 : i32
    %1 = arith.extui %0 : i1 to i32
    %c0_i32_0 = arith.constant 0 : i32
    %2 = arith.cmpi ne, %1, %c0_i32_0 : i32
    scf.if %2 {
      %cst_202 = arith.constant 0.000000e+00 : f32
      %371 = vector.broadcast %cst_202 : f32 to vector<2x32xf32>
      %c0_203 = arith.constant 0 : index
      %c0_204 = arith.constant 0 : index
      %372 = vector.load %arg8[%c0_203, %c0_204] : memref<2x32xf32, #tpu.memory_space<vmem>>, vector<2x32xf32>
      tpu.vector_store %arg8[%c0_203, %c0_204], %371 {strides = array<i32>} : memref<2x32xf32, #tpu.memory_space<vmem>>, vector<2x32xf32>,
      %cst_205 = arith.constant 0.000000e+00 : f32
      %373 = vector.broadcast %cst_205 : f32 to vector<2x32xf32>
      %c0_206 = arith.constant 0 : index
      %c0_207 = arith.constant 0 : index
      %374 = vector.load %arg9[%c0_206, %c0_207] : memref<2x32xf32, #tpu.memory_space<vmem>>, vector<2x32xf32>
      tpu.vector_store %arg9[%c0_206, %c0_207], %373 {strides = array<i32>} : memref<2x32xf32, #tpu.memory_space<vmem>>, vector<2x32xf32>,
    } else {
    }
    %c0 = arith.constant 0 : index
    %c0_1 = arith.constant 0 : index
    %c0_2 = arith.constant 0 : index
    %3 = vector.load %arg2[%c0, %c0_1, %c0_2] : memref<8x2x32xf32, #tpu.memory_space<vmem>>, vector<8x2x32xf32>
    %4 = vector.shape_cast %3 : vector<8x2x32xf32> to vector<16x32xf32>
    %c0_3 = arith.constant 0 : index
    %c0_4 = arith.constant 0 : index
    %5 = vector.load %arg3[%c0_3, %c0_4] : memref<32x128xf32, #tpu.memory_space<vmem>>, vector<32x128xf32>
    %cst = arith.constant dense<0.000000e+00> : vector<16x128xf32>
    %6 = tpu.matmul %4, %5, %cst {dimension_numbers = #tpu.dot_dimension_numbers<[1], [0], [0], [1], [0, 0, 1, 1], [], []>} : vector<16x32xf32>, vector<32x128xf32>, vector<16x128xf32> -> vector<16x128xf32>
    %c0_5 = arith.constant 0 : index
    %c0_6 = arith.constant 0 : index
    %7 = vector.load %arg5[%c0_5, %c0_6] : memref<1x128xf32, #tpu.memory_space<vmem>>, vector<1x128xf32>
    %8 = vector.broadcast %7 : vector<1x128xf32> to vector<16x128xf32>
    %9 = arith.addf %6, %8 : vector<16x128xf32>
    %c0_7 = arith.constant 0 : index
    %c0_8 = arith.constant 0 : index
    %10 = vector.load %arg7[%c0_7, %c0_8] : memref<16x128xf32, #tpu.memory_space<vmem>>, vector<16x128xf32>
    tpu.vector_store %arg7[%c0_7, %c0_8], %9 {strides = array<i32>} : memref<16x128xf32, #tpu.memory_space<vmem>>, vector<16x128xf32>,
    %c0_i32_9 = arith.constant 0 : i32
    %c2_i32 = arith.constant 2 : i32
    %11 = arith.muli %c0_i32_9, %c2_i32 : i32
    %12 = tpu.assume_multiple %11, 2 : i32
    %13 = arith.index_cast %12 : i32 to index
    %c0_10 = arith.constant 0 : index
    %14 = vector.load %arg7[%13, %c0_10] : memref<16x128xf32, #tpu.memory_space<vmem>>, vector<2x128xf32>
    %c0_11 = arith.constant 0 : index
    %c0_12 = arith.constant 0 : index
    %15 = vector.load %arg8[%c0_11, %c0_12] : memref<2x32xf32, #tpu.memory_space<vmem>>, vector<2x32xf32>
    %c0_13 = arith.constant 0 : index
    %c0_14 = arith.constant 0 : index
    %16 = vector.load %arg4[%c0_13, %c0_14] : memref<32x128xf32, #tpu.memory_space<vmem>>, vector<32x128xf32>
    %cst_15 = arith.constant dense<0.000000e+00> : vector<2x128xf32>
    %17 = tpu.matmul %15, %16, %cst_15 {dimension_numbers = #tpu.dot_dimension_numbers<[1], [0], [0], [1], [0, 0, 1, 1], [], []>} : vector<2x32xf32>, vector<32x128xf32>, vector<2x128xf32> -> vector<2x128xf32>
    %18 = arith.addf %14, %17 : vector<2x128xf32>
    %19 = vector.extract_strided_slice %18 {offsets = [0, 0], sizes = [2, 32], strides = [1, 1]} : vector<2x128xf32> to vector<2x32xf32>
    %cst_16 = arith.constant 5.000000e-01 : f32
    %20 = vector.broadcast %cst_16 : f32 to vector<2x32xf32>
    %21 = arith.mulf %20, %19 : vector<2x32xf32>
    %22 = math.tanh %21 : vector<2x32xf32>
    %cst_17 = arith.constant 1.000000e+00 : f32
    %23 = vector.broadcast %cst_17 : f32 to vector<2x32xf32>
    %24 = arith.addf %23, %22 : vector<2x32xf32>
    %cst_18 = arith.constant 5.000000e-01 : f32
    %25 = vector.broadcast %cst_18 : f32 to vector<2x32xf32>
    %26 = arith.mulf %25, %24 : vector<2x32xf32>
    %27 = vector.extract_strided_slice %18 {offsets = [0, 32], sizes = [2, 32], strides = [1, 1]} : vector<2x128xf32> to vector<2x32xf32>
    %cst_19 = arith.constant 5.000000e-01 : f32
    %28 = vector.broadcast %cst_19 : f32 to vector<2x32xf32>
    %29 = arith.mulf %28, %27 : vector<2x32xf32>
    %30 = math.tanh %29 : vector<2x32xf32>
    %cst_20 = arith.constant 1.000000e+00 : f32
    %31 = vector.broadcast %cst_20 : f32 to vector<2x32xf32>
    %32 = arith.addf %31, %30 : vector<2x32xf32>
    %cst_21 = arith.constant 5.000000e-01 : f32
    %33 = vector.broadcast %cst_21 : f32 to vector<2x32xf32>
    %34 = arith.mulf %33, %32 : vector<2x32xf32>
    %35 = vector.extract_strided_slice %18 {offsets = [0, 64], sizes = [2, 32], strides = [1, 1]} : vector<2x128xf32> to vector<2x32xf32>
    %36 = math.tanh %35 : vector<2x32xf32>
    %37 = vector.extract_strided_slice %18 {offsets = [0, 96], sizes = [2, 32], strides = [1, 1]} : vector<2x128xf32> to vector<2x32xf32>
    %cst_22 = arith.constant 5.000000e-01 : f32
    %38 = vector.broadcast %cst_22 : f32 to vector<2x32xf32>
    %39 = arith.mulf %38, %37 : vector<2x32xf32>
    %40 = math.tanh %39 : vector<2x32xf32>
    %cst_23 = arith.constant 1.000000e+00 : f32
    %41 = vector.broadcast %cst_23 : f32 to vector<2x32xf32>
    %42 = arith.addf %41, %40 : vector<2x32xf32>
    %cst_24 = arith.constant 5.000000e-01 : f32
    %43 = vector.broadcast %cst_24 : f32 to vector<2x32xf32>
    %44 = arith.mulf %43, %42 : vector<2x32xf32>
    %c0_25 = arith.constant 0 : index
    %c0_26 = arith.constant 0 : index
    %45 = vector.load %arg9[%c0_25, %c0_26] : memref<2x32xf32, #tpu.memory_space<vmem>>, vector<2x32xf32>
    %46 = arith.mulf %34, %45 : vector<2x32xf32>
    %47 = arith.mulf %26, %36 : vector<2x32xf32>
    %48 = arith.addf %46, %47 : vector<2x32xf32>
    %49 = math.tanh %48 : vector<2x32xf32>
    %50 = arith.mulf %44, %49 : vector<2x32xf32>
    %c0_27 = arith.constant 0 : index
    %c0_28 = arith.constant 0 : index
    %51 = vector.load %arg9[%c0_27, %c0_28] : memref<2x32xf32, #tpu.memory_space<vmem>>, vector<2x32xf32>
    tpu.vector_store %arg9[%c0_27, %c0_28], %48 {strides = array<i32>} : memref<2x32xf32, #tpu.memory_space<vmem>>, vector<2x32xf32>,
    %c0_29 = arith.constant 0 : index
    %c0_30 = arith.constant 0 : index
    %52 = vector.load %arg8[%c0_29, %c0_30] : memref<2x32xf32, #tpu.memory_space<vmem>>, vector<2x32xf32>
    tpu.vector_store %arg8[%c0_29, %c0_30], %50 {strides = array<i32>} : memref<2x32xf32, #tpu.memory_space<vmem>>, vector<2x32xf32>,
    %53 = vector.shape_cast %50 : vector<2x32xf32> to vector<1x2x32xf32>
    %54 = arith.index_cast %c0_i32_9 : i32 to index
    %c0_31 = arith.constant 0 : index
    %c0_32 = arith.constant 0 : index
    %55 = vector.load %arg6[%54, %c0_31, %c0_32] : memref<8x2x32xf32, #tpu.memory_space<vmem>>, vector<1x2x32xf32>
    tpu.vector_store %arg6[%54, %c0_31, %c0_32], %53 {strides = array<i32>} : memref<8x2x32xf32, #tpu.memory_space<vmem>>, vector<1x2x32xf32>,
    %c1_i32 = arith.constant 1 : i32
    %c2_i32_33 = arith.constant 2 : i32
    %56 = arith.muli %c1_i32, %c2_i32_33 : i32
    %57 = tpu.assume_multiple %56, 2 : i32
    %58 = arith.index_cast %57 : i32 to index
    %c0_34 = arith.constant 0 : index
    %59 = vector.load %arg7[%58, %c0_34] : memref<16x128xf32, #tpu.memory_space<vmem>>, vector<2x128xf32>
    %c0_35 = arith.constant 0 : index
    %c0_36 = arith.constant 0 : index
    %60 = vector.load %arg8[%c0_35, %c0_36] : memref<2x32xf32, #tpu.memory_space<vmem>>, vector<2x32xf32>
    %c0_37 = arith.constant 0 : index
    %c0_38 = arith.constant 0 : index
    %61 = vector.load %arg4[%c0_37, %c0_38] : memref<32x128xf32, #tpu.memory_space<vmem>>, vector<32x128xf32>
    %cst_39 = arith.constant dense<0.000000e+00> : vector<2x128xf32>
    %62 = tpu.matmul %60, %61, %cst_39 {dimension_numbers = #tpu.dot_dimension_numbers<[1], [0], [0], [1], [0, 0, 1, 1], [], []>} : vector<2x32xf32>, vector<32x128xf32>, vector<2x128xf32> -> vector<2x128xf32>
    %63 = arith.addf %59, %62 : vector<2x128xf32>
    %64 = vector.extract_strided_slice %63 {offsets = [0, 0], sizes = [2, 32], strides = [1, 1]} : vector<2x128xf32> to vector<2x32xf32>
    %cst_40 = arith.constant 5.000000e-01 : f32
    %65 = vector.broadcast %cst_40 : f32 to vector<2x32xf32>
    %66 = arith.mulf %65, %64 : vector<2x32xf32>
    %67 = math.tanh %66 : vector<2x32xf32>
    %cst_41 = arith.constant 1.000000e+00 : f32
    %68 = vector.broadcast %cst_41 : f32 to vector<2x32xf32>
    %69 = arith.addf %68, %67 : vector<2x32xf32>
    %cst_42 = arith.constant 5.000000e-01 : f32
    %70 = vector.broadcast %cst_42 : f32 to vector<2x32xf32>
    %71 = arith.mulf %70, %69 : vector<2x32xf32>
    %72 = vector.extract_strided_slice %63 {offsets = [0, 32], sizes = [2, 32], strides = [1, 1]} : vector<2x128xf32> to vector<2x32xf32>
    %cst_43 = arith.constant 5.000000e-01 : f32
    %73 = vector.broadcast %cst_43 : f32 to vector<2x32xf32>
    %74 = arith.mulf %73, %72 : vector<2x32xf32>
    %75 = math.tanh %74 : vector<2x32xf32>
    %cst_44 = arith.constant 1.000000e+00 : f32
    %76 = vector.broadcast %cst_44 : f32 to vector<2x32xf32>
    %77 = arith.addf %76, %75 : vector<2x32xf32>
    %cst_45 = arith.constant 5.000000e-01 : f32
    %78 = vector.broadcast %cst_45 : f32 to vector<2x32xf32>
    %79 = arith.mulf %78, %77 : vector<2x32xf32>
    %80 = vector.extract_strided_slice %63 {offsets = [0, 64], sizes = [2, 32], strides = [1, 1]} : vector<2x128xf32> to vector<2x32xf32>
    %81 = math.tanh %80 : vector<2x32xf32>
    %82 = vector.extract_strided_slice %63 {offsets = [0, 96], sizes = [2, 32], strides = [1, 1]} : vector<2x128xf32> to vector<2x32xf32>
    %cst_46 = arith.constant 5.000000e-01 : f32
    %83 = vector.broadcast %cst_46 : f32 to vector<2x32xf32>
    %84 = arith.mulf %83, %82 : vector<2x32xf32>
    %85 = math.tanh %84 : vector<2x32xf32>
    %cst_47 = arith.constant 1.000000e+00 : f32
    %86 = vector.broadcast %cst_47 : f32 to vector<2x32xf32>
    %87 = arith.addf %86, %85 : vector<2x32xf32>
    %cst_48 = arith.constant 5.000000e-01 : f32
    %88 = vector.broadcast %cst_48 : f32 to vector<2x32xf32>
    %89 = arith.mulf %88, %87 : vector<2x32xf32>
    %c0_49 = arith.constant 0 : index
    %c0_50 = arith.constant 0 : index
    %90 = vector.load %arg9[%c0_49, %c0_50] : memref<2x32xf32, #tpu.memory_space<vmem>>, vector<2x32xf32>
    %91 = arith.mulf %79, %90 : vector<2x32xf32>
    %92 = arith.mulf %71, %81 : vector<2x32xf32>
    %93 = arith.addf %91, %92 : vector<2x32xf32>
    %94 = math.tanh %93 : vector<2x32xf32>
    %95 = arith.mulf %89, %94 : vector<2x32xf32>
    %c0_51 = arith.constant 0 : index
    %c0_52 = arith.constant 0 : index
    %96 = vector.load %arg9[%c0_51, %c0_52] : memref<2x32xf32, #tpu.memory_space<vmem>>, vector<2x32xf32>
    tpu.vector_store %arg9[%c0_51, %c0_52], %93 {strides = array<i32>} : memref<2x32xf32, #tpu.memory_space<vmem>>, vector<2x32xf32>,
    %c0_53 = arith.constant 0 : index
    %c0_54 = arith.constant 0 : index
    %97 = vector.load %arg8[%c0_53, %c0_54] : memref<2x32xf32, #tpu.memory_space<vmem>>, vector<2x32xf32>
    tpu.vector_store %arg8[%c0_53, %c0_54], %95 {strides = array<i32>} : memref<2x32xf32, #tpu.memory_space<vmem>>, vector<2x32xf32>,
    %98 = vector.shape_cast %95 : vector<2x32xf32> to vector<1x2x32xf32>
    %99 = arith.index_cast %c1_i32 : i32 to index
    %c0_55 = arith.constant 0 : index
    %c0_56 = arith.constant 0 : index
    %100 = vector.load %arg6[%99, %c0_55, %c0_56] : memref<8x2x32xf32, #tpu.memory_space<vmem>>, vector<1x2x32xf32>
    tpu.vector_store %arg6[%99, %c0_55, %c0_56], %98 {strides = array<i32>} : memref<8x2x32xf32, #tpu.memory_space<vmem>>, vector<1x2x32xf32>,
    %c2_i32_57 = arith.constant 2 : i32
    %c2_i32_58 = arith.constant 2 : i32
    %101 = arith.muli %c2_i32_57, %c2_i32_58 : i32
    %102 = tpu.assume_multiple %101, 2 : i32
    %103 = arith.index_cast %102 : i32 to index
    %c0_59 = arith.constant 0 : index
    %104 = vector.load %arg7[%103, %c0_59] : memref<16x128xf32, #tpu.memory_space<vmem>>, vector<2x128xf32>
    %c0_60 = arith.constant 0 : index
    %c0_61 = arith.constant 0 : index
    %105 = vector.load %arg8[%c0_60, %c0_61] : memref<2x32xf32, #tpu.memory_space<vmem>>, vector<2x32xf32>
    %c0_62 = arith.constant 0 : index
    %c0_63 = arith.constant 0 : index
    %106 = vector.load %arg4[%c0_62, %c0_63] : memref<32x128xf32, #tpu.memory_space<vmem>>, vector<32x128xf32>
    %cst_64 = arith.constant dense<0.000000e+00> : vector<2x128xf32>
    %107 = tpu.matmul %105, %106, %cst_64 {dimension_numbers = #tpu.dot_dimension_numbers<[1], [0], [0], [1], [0, 0, 1, 1], [], []>} : vector<2x32xf32>, vector<32x128xf32>, vector<2x128xf32> -> vector<2x128xf32>
    %108 = arith.addf %104, %107 : vector<2x128xf32>
    %109 = vector.extract_strided_slice %108 {offsets = [0, 0], sizes = [2, 32], strides = [1, 1]} : vector<2x128xf32> to vector<2x32xf32>
    %cst_65 = arith.constant 5.000000e-01 : f32
    %110 = vector.broadcast %cst_65 : f32 to vector<2x32xf32>
    %111 = arith.mulf %110, %109 : vector<2x32xf32>
    %112 = math.tanh %111 : vector<2x32xf32>
    %cst_66 = arith.constant 1.000000e+00 : f32
    %113 = vector.broadcast %cst_66 : f32 to vector<2x32xf32>
    %114 = arith.addf %113, %112 : vector<2x32xf32>
    %cst_67 = arith.constant 5.000000e-01 : f32
    %115 = vector.broadcast %cst_67 : f32 to vector<2x32xf32>
    %116 = arith.mulf %115, %114 : vector<2x32xf32>
    %117 = vector.extract_strided_slice %108 {offsets = [0, 32], sizes = [2, 32], strides = [1, 1]} : vector<2x128xf32> to vector<2x32xf32>
    %cst_68 = arith.constant 5.000000e-01 : f32
    %118 = vector.broadcast %cst_68 : f32 to vector<2x32xf32>
    %119 = arith.mulf %118, %117 : vector<2x32xf32>
    %120 = math.tanh %119 : vector<2x32xf32>
    %cst_69 = arith.constant 1.000000e+00 : f32
    %121 = vector.broadcast %cst_69 : f32 to vector<2x32xf32>
    %122 = arith.addf %121, %120 : vector<2x32xf32>
    %cst_70 = arith.constant 5.000000e-01 : f32
    %123 = vector.broadcast %cst_70 : f32 to vector<2x32xf32>
    %124 = arith.mulf %123, %122 : vector<2x32xf32>
    %125 = vector.extract_strided_slice %108 {offsets = [0, 64], sizes = [2, 32], strides = [1, 1]} : vector<2x128xf32> to vector<2x32xf32>
    %126 = math.tanh %125 : vector<2x32xf32>
    %127 = vector.extract_strided_slice %108 {offsets = [0, 96], sizes = [2, 32], strides = [1, 1]} : vector<2x128xf32> to vector<2x32xf32>
    %cst_71 = arith.constant 5.000000e-01 : f32
    %128 = vector.broadcast %cst_71 : f32 to vector<2x32xf32>
    %129 = arith.mulf %128, %127 : vector<2x32xf32>
    %130 = math.tanh %129 : vector<2x32xf32>
    %cst_72 = arith.constant 1.000000e+00 : f32
    %131 = vector.broadcast %cst_72 : f32 to vector<2x32xf32>
    %132 = arith.addf %131, %130 : vector<2x32xf32>
    %cst_73 = arith.constant 5.000000e-01 : f32
    %133 = vector.broadcast %cst_73 : f32 to vector<2x32xf32>
    %134 = arith.mulf %133, %132 : vector<2x32xf32>
    %c0_74 = arith.constant 0 : index
    %c0_75 = arith.constant 0 : index
    %135 = vector.load %arg9[%c0_74, %c0_75] : memref<2x32xf32, #tpu.memory_space<vmem>>, vector<2x32xf32>
    %136 = arith.mulf %124, %135 : vector<2x32xf32>
    %137 = arith.mulf %116, %126 : vector<2x32xf32>
    %138 = arith.addf %136, %137 : vector<2x32xf32>
    %139 = math.tanh %138 : vector<2x32xf32>
    %140 = arith.mulf %134, %139 : vector<2x32xf32>
    %c0_76 = arith.constant 0 : index
    %c0_77 = arith.constant 0 : index
    %141 = vector.load %arg9[%c0_76, %c0_77] : memref<2x32xf32, #tpu.memory_space<vmem>>, vector<2x32xf32>
    tpu.vector_store %arg9[%c0_76, %c0_77], %138 {strides = array<i32>} : memref<2x32xf32, #tpu.memory_space<vmem>>, vector<2x32xf32>,
    %c0_78 = arith.constant 0 : index
    %c0_79 = arith.constant 0 : index
    %142 = vector.load %arg8[%c0_78, %c0_79] : memref<2x32xf32, #tpu.memory_space<vmem>>, vector<2x32xf32>
    tpu.vector_store %arg8[%c0_78, %c0_79], %140 {strides = array<i32>} : memref<2x32xf32, #tpu.memory_space<vmem>>, vector<2x32xf32>,
    %143 = vector.shape_cast %140 : vector<2x32xf32> to vector<1x2x32xf32>
    %144 = arith.index_cast %c2_i32_57 : i32 to index
    %c0_80 = arith.constant 0 : index
    %c0_81 = arith.constant 0 : index
    %145 = vector.load %arg6[%144, %c0_80, %c0_81] : memref<8x2x32xf32, #tpu.memory_space<vmem>>, vector<1x2x32xf32>
    tpu.vector_store %arg6[%144, %c0_80, %c0_81], %143 {strides = array<i32>} : memref<8x2x32xf32, #tpu.memory_space<vmem>>, vector<1x2x32xf32>,
    %c3_i32 = arith.constant 3 : i32
    %c2_i32_82 = arith.constant 2 : i32
    %146 = arith.muli %c3_i32, %c2_i32_82 : i32
    %147 = tpu.assume_multiple %146, 2 : i32
    %148 = arith.index_cast %147 : i32 to index
    %c0_83 = arith.constant 0 : index
    %149 = vector.load %arg7[%148, %c0_83] : memref<16x128xf32, #tpu.memory_space<vmem>>, vector<2x128xf32>
    %c0_84 = arith.constant 0 : index
    %c0_85 = arith.constant 0 : index
    %150 = vector.load %arg8[%c0_84, %c0_85] : memref<2x32xf32, #tpu.memory_space<vmem>>, vector<2x32xf32>
    %c0_86 = arith.constant 0 : index
    %c0_87 = arith.constant 0 : index
    %151 = vector.load %arg4[%c0_86, %c0_87] : memref<32x128xf32, #tpu.memory_space<vmem>>, vector<32x128xf32>
    %cst_88 = arith.constant dense<0.000000e+00> : vector<2x128xf32>
    %152 = tpu.matmul %150, %151, %cst_88 {dimension_numbers = #tpu.dot_dimension_numbers<[1], [0], [0], [1], [0, 0, 1, 1], [], []>} : vector<2x32xf32>, vector<32x128xf32>, vector<2x128xf32> -> vector<2x128xf32>
    %153 = arith.addf %149, %152 : vector<2x128xf32>
    %154 = vector.extract_strided_slice %153 {offsets = [0, 0], sizes = [2, 32], strides = [1, 1]} : vector<2x128xf32> to vector<2x32xf32>
    %cst_89 = arith.constant 5.000000e-01 : f32
    %155 = vector.broadcast %cst_89 : f32 to vector<2x32xf32>
    %156 = arith.mulf %155, %154 : vector<2x32xf32>
    %157 = math.tanh %156 : vector<2x32xf32>
    %cst_90 = arith.constant 1.000000e+00 : f32
    %158 = vector.broadcast %cst_90 : f32 to vector<2x32xf32>
    %159 = arith.addf %158, %157 : vector<2x32xf32>
    %cst_91 = arith.constant 5.000000e-01 : f32
    %160 = vector.broadcast %cst_91 : f32 to vector<2x32xf32>
    %161 = arith.mulf %160, %159 : vector<2x32xf32>
    %162 = vector.extract_strided_slice %153 {offsets = [0, 32], sizes = [2, 32], strides = [1, 1]} : vector<2x128xf32> to vector<2x32xf32>
    %cst_92 = arith.constant 5.000000e-01 : f32
    %163 = vector.broadcast %cst_92 : f32 to vector<2x32xf32>
    %164 = arith.mulf %163, %162 : vector<2x32xf32>
    %165 = math.tanh %164 : vector<2x32xf32>
    %cst_93 = arith.constant 1.000000e+00 : f32
    %166 = vector.broadcast %cst_93 : f32 to vector<2x32xf32>
    %167 = arith.addf %166, %165 : vector<2x32xf32>
    %cst_94 = arith.constant 5.000000e-01 : f32
    %168 = vector.broadcast %cst_94 : f32 to vector<2x32xf32>
    %169 = arith.mulf %168, %167 : vector<2x32xf32>
    %170 = vector.extract_strided_slice %153 {offsets = [0, 64], sizes = [2, 32], strides = [1, 1]} : vector<2x128xf32> to vector<2x32xf32>
    %171 = math.tanh %170 : vector<2x32xf32>
    %172 = vector.extract_strided_slice %153 {offsets = [0, 96], sizes = [2, 32], strides = [1, 1]} : vector<2x128xf32> to vector<2x32xf32>
    %cst_95 = arith.constant 5.000000e-01 : f32
    %173 = vector.broadcast %cst_95 : f32 to vector<2x32xf32>
    %174 = arith.mulf %173, %172 : vector<2x32xf32>
    %175 = math.tanh %174 : vector<2x32xf32>
    %cst_96 = arith.constant 1.000000e+00 : f32
    %176 = vector.broadcast %cst_96 : f32 to vector<2x32xf32>
    %177 = arith.addf %176, %175 : vector<2x32xf32>
    %cst_97 = arith.constant 5.000000e-01 : f32
    %178 = vector.broadcast %cst_97 : f32 to vector<2x32xf32>
    %179 = arith.mulf %178, %177 : vector<2x32xf32>
    %c0_98 = arith.constant 0 : index
    %c0_99 = arith.constant 0 : index
    %180 = vector.load %arg9[%c0_98, %c0_99] : memref<2x32xf32, #tpu.memory_space<vmem>>, vector<2x32xf32>
    %181 = arith.mulf %169, %180 : vector<2x32xf32>
    %182 = arith.mulf %161, %171 : vector<2x32xf32>
    %183 = arith.addf %181, %182 : vector<2x32xf32>
    %184 = math.tanh %183 : vector<2x32xf32>
    %185 = arith.mulf %179, %184 : vector<2x32xf32>
    %c0_100 = arith.constant 0 : index
    %c0_101 = arith.constant 0 : index
    %186 = vector.load %arg9[%c0_100, %c0_101] : memref<2x32xf32, #tpu.memory_space<vmem>>, vector<2x32xf32>
    tpu.vector_store %arg9[%c0_100, %c0_101], %183 {strides = array<i32>} : memref<2x32xf32, #tpu.memory_space<vmem>>, vector<2x32xf32>,
    %c0_102 = arith.constant 0 : index
    %c0_103 = arith.constant 0 : index
    %187 = vector.load %arg8[%c0_102, %c0_103] : memref<2x32xf32, #tpu.memory_space<vmem>>, vector<2x32xf32>
    tpu.vector_store %arg8[%c0_102, %c0_103], %185 {strides = array<i32>} : memref<2x32xf32, #tpu.memory_space<vmem>>, vector<2x32xf32>,
    %188 = vector.shape_cast %185 : vector<2x32xf32> to vector<1x2x32xf32>
    %189 = arith.index_cast %c3_i32 : i32 to index
    %c0_104 = arith.constant 0 : index
    %c0_105 = arith.constant 0 : index
    %190 = vector.load %arg6[%189, %c0_104, %c0_105] : memref<8x2x32xf32, #tpu.memory_space<vmem>>, vector<1x2x32xf32>
    tpu.vector_store %arg6[%189, %c0_104, %c0_105], %188 {strides = array<i32>} : memref<8x2x32xf32, #tpu.memory_space<vmem>>, vector<1x2x32xf32>,
    %c4_i32 = arith.constant 4 : i32
    %c2_i32_106 = arith.constant 2 : i32
    %191 = arith.muli %c4_i32, %c2_i32_106 : i32
    %192 = tpu.assume_multiple %191, 2 : i32
    %193 = arith.index_cast %192 : i32 to index
    %c0_107 = arith.constant 0 : index
    %194 = vector.load %arg7[%193, %c0_107] : memref<16x128xf32, #tpu.memory_space<vmem>>, vector<2x128xf32>
    %c0_108 = arith.constant 0 : index
    %c0_109 = arith.constant 0 : index
    %195 = vector.load %arg8[%c0_108, %c0_109] : memref<2x32xf32, #tpu.memory_space<vmem>>, vector<2x32xf32>
    %c0_110 = arith.constant 0 : index
    %c0_111 = arith.constant 0 : index
    %196 = vector.load %arg4[%c0_110, %c0_111] : memref<32x128xf32, #tpu.memory_space<vmem>>, vector<32x128xf32>
    %cst_112 = arith.constant dense<0.000000e+00> : vector<2x128xf32>
    %197 = tpu.matmul %195, %196, %cst_112 {dimension_numbers = #tpu.dot_dimension_numbers<[1], [0], [0], [1], [0, 0, 1, 1], [], []>} : vector<2x32xf32>, vector<32x128xf32>, vector<2x128xf32> -> vector<2x128xf32>
    %198 = arith.addf %194, %197 : vector<2x128xf32>
    %199 = vector.extract_strided_slice %198 {offsets = [0, 0], sizes = [2, 32], strides = [1, 1]} : vector<2x128xf32> to vector<2x32xf32>
    %cst_113 = arith.constant 5.000000e-01 : f32
    %200 = vector.broadcast %cst_113 : f32 to vector<2x32xf32>
    %201 = arith.mulf %200, %199 : vector<2x32xf32>
    %202 = math.tanh %201 : vector<2x32xf32>
    %cst_114 = arith.constant 1.000000e+00 : f32
    %203 = vector.broadcast %cst_114 : f32 to vector<2x32xf32>
    %204 = arith.addf %203, %202 : vector<2x32xf32>
    %cst_115 = arith.constant 5.000000e-01 : f32
    %205 = vector.broadcast %cst_115 : f32 to vector<2x32xf32>
    %206 = arith.mulf %205, %204 : vector<2x32xf32>
    %207 = vector.extract_strided_slice %198 {offsets = [0, 32], sizes = [2, 32], strides = [1, 1]} : vector<2x128xf32> to vector<2x32xf32>
    %cst_116 = arith.constant 5.000000e-01 : f32
    %208 = vector.broadcast %cst_116 : f32 to vector<2x32xf32>
    %209 = arith.mulf %208, %207 : vector<2x32xf32>
    %210 = math.tanh %209 : vector<2x32xf32>
    %cst_117 = arith.constant 1.000000e+00 : f32
    %211 = vector.broadcast %cst_117 : f32 to vector<2x32xf32>
    %212 = arith.addf %211, %210 : vector<2x32xf32>
    %cst_118 = arith.constant 5.000000e-01 : f32
    %213 = vector.broadcast %cst_118 : f32 to vector<2x32xf32>
    %214 = arith.mulf %213, %212 : vector<2x32xf32>
    %215 = vector.extract_strided_slice %198 {offsets = [0, 64], sizes = [2, 32], strides = [1, 1]} : vector<2x128xf32> to vector<2x32xf32>
    %216 = math.tanh %215 : vector<2x32xf32>
    %217 = vector.extract_strided_slice %198 {offsets = [0, 96], sizes = [2, 32], strides = [1, 1]} : vector<2x128xf32> to vector<2x32xf32>
    %cst_119 = arith.constant 5.000000e-01 : f32
    %218 = vector.broadcast %cst_119 : f32 to vector<2x32xf32>
    %219 = arith.mulf %218, %217 : vector<2x32xf32>
    %220 = math.tanh %219 : vector<2x32xf32>
    %cst_120 = arith.constant 1.000000e+00 : f32
    %221 = vector.broadcast %cst_120 : f32 to vector<2x32xf32>
    %222 = arith.addf %221, %220 : vector<2x32xf32>
    %cst_121 = arith.constant 5.000000e-01 : f32
    %223 = vector.broadcast %cst_121 : f32 to vector<2x32xf32>
    %224 = arith.mulf %223, %222 : vector<2x32xf32>
    %c0_122 = arith.constant 0 : index
    %c0_123 = arith.constant 0 : index
    %225 = vector.load %arg9[%c0_122, %c0_123] : memref<2x32xf32, #tpu.memory_space<vmem>>, vector<2x32xf32>
    %226 = arith.mulf %214, %225 : vector<2x32xf32>
    %227 = arith.mulf %206, %216 : vector<2x32xf32>
    %228 = arith.addf %226, %227 : vector<2x32xf32>
    %229 = math.tanh %228 : vector<2x32xf32>
    %230 = arith.mulf %224, %229 : vector<2x32xf32>
    %c0_124 = arith.constant 0 : index
    %c0_125 = arith.constant 0 : index
    %231 = vector.load %arg9[%c0_124, %c0_125] : memref<2x32xf32, #tpu.memory_space<vmem>>, vector<2x32xf32>
    tpu.vector_store %arg9[%c0_124, %c0_125], %228 {strides = array<i32>} : memref<2x32xf32, #tpu.memory_space<vmem>>, vector<2x32xf32>,
    %c0_126 = arith.constant 0 : index
    %c0_127 = arith.constant 0 : index
    %232 = vector.load %arg8[%c0_126, %c0_127] : memref<2x32xf32, #tpu.memory_space<vmem>>, vector<2x32xf32>
    tpu.vector_store %arg8[%c0_126, %c0_127], %230 {strides = array<i32>} : memref<2x32xf32, #tpu.memory_space<vmem>>, vector<2x32xf32>,
    %233 = vector.shape_cast %230 : vector<2x32xf32> to vector<1x2x32xf32>
    %234 = arith.index_cast %c4_i32 : i32 to index
    %c0_128 = arith.constant 0 : index
    %c0_129 = arith.constant 0 : index
    %235 = vector.load %arg6[%234, %c0_128, %c0_129] : memref<8x2x32xf32, #tpu.memory_space<vmem>>, vector<1x2x32xf32>
    tpu.vector_store %arg6[%234, %c0_128, %c0_129], %233 {strides = array<i32>} : memref<8x2x32xf32, #tpu.memory_space<vmem>>, vector<1x2x32xf32>,
    %c5_i32 = arith.constant 5 : i32
    %c2_i32_130 = arith.constant 2 : i32
    %236 = arith.muli %c5_i32, %c2_i32_130 : i32
    %237 = tpu.assume_multiple %236, 2 : i32
    %238 = arith.index_cast %237 : i32 to index
    %c0_131 = arith.constant 0 : index
    %239 = vector.load %arg7[%238, %c0_131] : memref<16x128xf32, #tpu.memory_space<vmem>>, vector<2x128xf32>
    %c0_132 = arith.constant 0 : index
    %c0_133 = arith.constant 0 : index
    %240 = vector.load %arg8[%c0_132, %c0_133] : memref<2x32xf32, #tpu.memory_space<vmem>>, vector<2x32xf32>
    %c0_134 = arith.constant 0 : index
    %c0_135 = arith.constant 0 : index
    %241 = vector.load %arg4[%c0_134, %c0_135] : memref<32x128xf32, #tpu.memory_space<vmem>>, vector<32x128xf32>
    %cst_136 = arith.constant dense<0.000000e+00> : vector<2x128xf32>
    %242 = tpu.matmul %240, %241, %cst_136 {dimension_numbers = #tpu.dot_dimension_numbers<[1], [0], [0], [1], [0, 0, 1, 1], [], []>} : vector<2x32xf32>, vector<32x128xf32>, vector<2x128xf32> -> vector<2x128xf32>
    %243 = arith.addf %239, %242 : vector<2x128xf32>
    %244 = vector.extract_strided_slice %243 {offsets = [0, 0], sizes = [2, 32], strides = [1, 1]} : vector<2x128xf32> to vector<2x32xf32>
    %cst_137 = arith.constant 5.000000e-01 : f32
    %245 = vector.broadcast %cst_137 : f32 to vector<2x32xf32>
    %246 = arith.mulf %245, %244 : vector<2x32xf32>
    %247 = math.tanh %246 : vector<2x32xf32>
    %cst_138 = arith.constant 1.000000e+00 : f32
    %248 = vector.broadcast %cst_138 : f32 to vector<2x32xf32>
    %249 = arith.addf %248, %247 : vector<2x32xf32>
    %cst_139 = arith.constant 5.000000e-01 : f32
    %250 = vector.broadcast %cst_139 : f32 to vector<2x32xf32>
    %251 = arith.mulf %250, %249 : vector<2x32xf32>
    %252 = vector.extract_strided_slice %243 {offsets = [0, 32], sizes = [2, 32], strides = [1, 1]} : vector<2x128xf32> to vector<2x32xf32>
    %cst_140 = arith.constant 5.000000e-01 : f32
    %253 = vector.broadcast %cst_140 : f32 to vector<2x32xf32>
    %254 = arith.mulf %253, %252 : vector<2x32xf32>
    %255 = math.tanh %254 : vector<2x32xf32>
    %cst_141 = arith.constant 1.000000e+00 : f32
    %256 = vector.broadcast %cst_141 : f32 to vector<2x32xf32>
    %257 = arith.addf %256, %255 : vector<2x32xf32>
    %cst_142 = arith.constant 5.000000e-01 : f32
    %258 = vector.broadcast %cst_142 : f32 to vector<2x32xf32>
    %259 = arith.mulf %258, %257 : vector<2x32xf32>
    %260 = vector.extract_strided_slice %243 {offsets = [0, 64], sizes = [2, 32], strides = [1, 1]} : vector<2x128xf32> to vector<2x32xf32>
    %261 = math.tanh %260 : vector<2x32xf32>
    %262 = vector.extract_strided_slice %243 {offsets = [0, 96], sizes = [2, 32], strides = [1, 1]} : vector<2x128xf32> to vector<2x32xf32>
    %cst_143 = arith.constant 5.000000e-01 : f32
    %263 = vector.broadcast %cst_143 : f32 to vector<2x32xf32>
    %264 = arith.mulf %263, %262 : vector<2x32xf32>
    %265 = math.tanh %264 : vector<2x32xf32>
    %cst_144 = arith.constant 1.000000e+00 : f32
    %266 = vector.broadcast %cst_144 : f32 to vector<2x32xf32>
    %267 = arith.addf %266, %265 : vector<2x32xf32>
    %cst_145 = arith.constant 5.000000e-01 : f32
    %268 = vector.broadcast %cst_145 : f32 to vector<2x32xf32>
    %269 = arith.mulf %268, %267 : vector<2x32xf32>
    %c0_146 = arith.constant 0 : index
    %c0_147 = arith.constant 0 : index
    %270 = vector.load %arg9[%c0_146, %c0_147] : memref<2x32xf32, #tpu.memory_space<vmem>>, vector<2x32xf32>
    %271 = arith.mulf %259, %270 : vector<2x32xf32>
    %272 = arith.mulf %251, %261 : vector<2x32xf32>
    %273 = arith.addf %271, %272 : vector<2x32xf32>
    %274 = math.tanh %273 : vector<2x32xf32>
    %275 = arith.mulf %269, %274 : vector<2x32xf32>
    %c0_148 = arith.constant 0 : index
    %c0_149 = arith.constant 0 : index
    %276 = vector.load %arg9[%c0_148, %c0_149] : memref<2x32xf32, #tpu.memory_space<vmem>>, vector<2x32xf32>
    tpu.vector_store %arg9[%c0_148, %c0_149], %273 {strides = array<i32>} : memref<2x32xf32, #tpu.memory_space<vmem>>, vector<2x32xf32>,
    %c0_150 = arith.constant 0 : index
    %c0_151 = arith.constant 0 : index
    %277 = vector.load %arg8[%c0_150, %c0_151] : memref<2x32xf32, #tpu.memory_space<vmem>>, vector<2x32xf32>
    tpu.vector_store %arg8[%c0_150, %c0_151], %275 {strides = array<i32>} : memref<2x32xf32, #tpu.memory_space<vmem>>, vector<2x32xf32>,
    %278 = vector.shape_cast %275 : vector<2x32xf32> to vector<1x2x32xf32>
    %279 = arith.index_cast %c5_i32 : i32 to index
    %c0_152 = arith.constant 0 : index
    %c0_153 = arith.constant 0 : index
    %280 = vector.load %arg6[%279, %c0_152, %c0_153] : memref<8x2x32xf32, #tpu.memory_space<vmem>>, vector<1x2x32xf32>
    tpu.vector_store %arg6[%279, %c0_152, %c0_153], %278 {strides = array<i32>} : memref<8x2x32xf32, #tpu.memory_space<vmem>>, vector<1x2x32xf32>,
    %c6_i32 = arith.constant 6 : i32
    %c2_i32_154 = arith.constant 2 : i32
    %281 = arith.muli %c6_i32, %c2_i32_154 : i32
    %282 = tpu.assume_multiple %281, 2 : i32
    %283 = arith.index_cast %282 : i32 to index
    %c0_155 = arith.constant 0 : index
    %284 = vector.load %arg7[%283, %c0_155] : memref<16x128xf32, #tpu.memory_space<vmem>>, vector<2x128xf32>
    %c0_156 = arith.constant 0 : index
    %c0_157 = arith.constant 0 : index
    %285 = vector.load %arg8[%c0_156, %c0_157] : memref<2x32xf32, #tpu.memory_space<vmem>>, vector<2x32xf32>
    %c0_158 = arith.constant 0 : index
    %c0_159 = arith.constant 0 : index
    %286 = vector.load %arg4[%c0_158, %c0_159] : memref<32x128xf32, #tpu.memory_space<vmem>>, vector<32x128xf32>
    %cst_160 = arith.constant dense<0.000000e+00> : vector<2x128xf32>
    %287 = tpu.matmul %285, %286, %cst_160 {dimension_numbers = #tpu.dot_dimension_numbers<[1], [0], [0], [1], [0, 0, 1, 1], [], []>} : vector<2x32xf32>, vector<32x128xf32>, vector<2x128xf32> -> vector<2x128xf32>
    %288 = arith.addf %284, %287 : vector<2x128xf32>
    %289 = vector.extract_strided_slice %288 {offsets = [0, 0], sizes = [2, 32], strides = [1, 1]} : vector<2x128xf32> to vector<2x32xf32>
    %cst_161 = arith.constant 5.000000e-01 : f32
    %290 = vector.broadcast %cst_161 : f32 to vector<2x32xf32>
    %291 = arith.mulf %290, %289 : vector<2x32xf32>
    %292 = math.tanh %291 : vector<2x32xf32>
    %cst_162 = arith.constant 1.000000e+00 : f32
    %293 = vector.broadcast %cst_162 : f32 to vector<2x32xf32>
    %294 = arith.addf %293, %292 : vector<2x32xf32>
    %cst_163 = arith.constant 5.000000e-01 : f32
    %295 = vector.broadcast %cst_163 : f32 to vector<2x32xf32>
    %296 = arith.mulf %295, %294 : vector<2x32xf32>
    %297 = vector.extract_strided_slice %288 {offsets = [0, 32], sizes = [2, 32], strides = [1, 1]} : vector<2x128xf32> to vector<2x32xf32>
    %cst_164 = arith.constant 5.000000e-01 : f32
    %298 = vector.broadcast %cst_164 : f32 to vector<2x32xf32>
    %299 = arith.mulf %298, %297 : vector<2x32xf32>
    %300 = math.tanh %299 : vector<2x32xf32>
    %cst_165 = arith.constant 1.000000e+00 : f32
    %301 = vector.broadcast %cst_165 : f32 to vector<2x32xf32>
    %302 = arith.addf %301, %300 : vector<2x32xf32>
    %cst_166 = arith.constant 5.000000e-01 : f32
    %303 = vector.broadcast %cst_166 : f32 to vector<2x32xf32>
    %304 = arith.mulf %303, %302 : vector<2x32xf32>
    %305 = vector.extract_strided_slice %288 {offsets = [0, 64], sizes = [2, 32], strides = [1, 1]} : vector<2x128xf32> to vector<2x32xf32>
    %306 = math.tanh %305 : vector<2x32xf32>
    %307 = vector.extract_strided_slice %288 {offsets = [0, 96], sizes = [2, 32], strides = [1, 1]} : vector<2x128xf32> to vector<2x32xf32>
    %cst_167 = arith.constant 5.000000e-01 : f32
    %308 = vector.broadcast %cst_167 : f32 to vector<2x32xf32>
    %309 = arith.mulf %308, %307 : vector<2x32xf32>
    %310 = math.tanh %309 : vector<2x32xf32>
    %cst_168 = arith.constant 1.000000e+00 : f32
    %311 = vector.broadcast %cst_168 : f32 to vector<2x32xf32>
    %312 = arith.addf %311, %310 : vector<2x32xf32>
    %cst_169 = arith.constant 5.000000e-01 : f32
    %313 = vector.broadcast %cst_169 : f32 to vector<2x32xf32>
    %314 = arith.mulf %313, %312 : vector<2x32xf32>
    %c0_170 = arith.constant 0 : index
    %c0_171 = arith.constant 0 : index
    %315 = vector.load %arg9[%c0_170, %c0_171] : memref<2x32xf32, #tpu.memory_space<vmem>>, vector<2x32xf32>
    %316 = arith.mulf %304, %315 : vector<2x32xf32>
    %317 = arith.mulf %296, %306 : vector<2x32xf32>
    %318 = arith.addf %316, %317 : vector<2x32xf32>
    %319 = math.tanh %318 : vector<2x32xf32>
    %320 = arith.mulf %314, %319 : vector<2x32xf32>
    %c0_172 = arith.constant 0 : index
    %c0_173 = arith.constant 0 : index
    %321 = vector.load %arg9[%c0_172, %c0_173] : memref<2x32xf32, #tpu.memory_space<vmem>>, vector<2x32xf32>
    tpu.vector_store %arg9[%c0_172, %c0_173], %318 {strides = array<i32>} : memref<2x32xf32, #tpu.memory_space<vmem>>, vector<2x32xf32>,
    %c0_174 = arith.constant 0 : index
    %c0_175 = arith.constant 0 : index
    %322 = vector.load %arg8[%c0_174, %c0_175] : memref<2x32xf32, #tpu.memory_space<vmem>>, vector<2x32xf32>
    tpu.vector_store %arg8[%c0_174, %c0_175], %320 {strides = array<i32>} : memref<2x32xf32, #tpu.memory_space<vmem>>, vector<2x32xf32>,
    %323 = vector.shape_cast %320 : vector<2x32xf32> to vector<1x2x32xf32>
    %324 = arith.index_cast %c6_i32 : i32 to index
    %c0_176 = arith.constant 0 : index
    %c0_177 = arith.constant 0 : index
    %325 = vector.load %arg6[%324, %c0_176, %c0_177] : memref<8x2x32xf32, #tpu.memory_space<vmem>>, vector<1x2x32xf32>
    tpu.vector_store %arg6[%324, %c0_176, %c0_177], %323 {strides = array<i32>} : memref<8x2x32xf32, #tpu.memory_space<vmem>>, vector<1x2x32xf32>,
    %c7_i32 = arith.constant 7 : i32
    %c2_i32_178 = arith.constant 2 : i32
    %326 = arith.muli %c7_i32, %c2_i32_178 : i32
    %327 = tpu.assume_multiple %326, 2 : i32
    %328 = arith.index_cast %327 : i32 to index
    %c0_179 = arith.constant 0 : index
    %329 = vector.load %arg7[%328, %c0_179] : memref<16x128xf32, #tpu.memory_space<vmem>>, vector<2x128xf32>
    %c0_180 = arith.constant 0 : index
    %c0_181 = arith.constant 0 : index
    %330 = vector.load %arg8[%c0_180, %c0_181] : memref<2x32xf32, #tpu.memory_space<vmem>>, vector<2x32xf32>
    %c0_182 = arith.constant 0 : index
    %c0_183 = arith.constant 0 : index
    %331 = vector.load %arg4[%c0_182, %c0_183] : memref<32x128xf32, #tpu.memory_space<vmem>>, vector<32x128xf32>
    %cst_184 = arith.constant dense<0.000000e+00> : vector<2x128xf32>
    %332 = tpu.matmul %330, %331, %cst_184 {dimension_numbers = #tpu.dot_dimension_numbers<[1], [0], [0], [1], [0, 0, 1, 1], [], []>} : vector<2x32xf32>, vector<32x128xf32>, vector<2x128xf32> -> vector<2x128xf32>
    %333 = arith.addf %329, %332 : vector<2x128xf32>
    %334 = vector.extract_strided_slice %333 {offsets = [0, 0], sizes = [2, 32], strides = [1, 1]} : vector<2x128xf32> to vector<2x32xf32>
    %cst_185 = arith.constant 5.000000e-01 : f32
    %335 = vector.broadcast %cst_185 : f32 to vector<2x32xf32>
    %336 = arith.mulf %335, %334 : vector<2x32xf32>
    %337 = math.tanh %336 : vector<2x32xf32>
    %cst_186 = arith.constant 1.000000e+00 : f32
    %338 = vector.broadcast %cst_186 : f32 to vector<2x32xf32>
    %339 = arith.addf %338, %337 : vector<2x32xf32>
    %cst_187 = arith.constant 5.000000e-01 : f32
    %340 = vector.broadcast %cst_187 : f32 to vector<2x32xf32>
    %341 = arith.mulf %340, %339 : vector<2x32xf32>
    %342 = vector.extract_strided_slice %333 {offsets = [0, 32], sizes = [2, 32], strides = [1, 1]} : vector<2x128xf32> to vector<2x32xf32>
    %cst_188 = arith.constant 5.000000e-01 : f32
    %343 = vector.broadcast %cst_188 : f32 to vector<2x32xf32>
    %344 = arith.mulf %343, %342 : vector<2x32xf32>
    %345 = math.tanh %344 : vector<2x32xf32>
    %cst_189 = arith.constant 1.000000e+00 : f32
    %346 = vector.broadcast %cst_189 : f32 to vector<2x32xf32>
    %347 = arith.addf %346, %345 : vector<2x32xf32>
    %cst_190 = arith.constant 5.000000e-01 : f32
    %348 = vector.broadcast %cst_190 : f32 to vector<2x32xf32>
    %349 = arith.mulf %348, %347 : vector<2x32xf32>
    %350 = vector.extract_strided_slice %333 {offsets = [0, 64], sizes = [2, 32], strides = [1, 1]} : vector<2x128xf32> to vector<2x32xf32>
    %351 = math.tanh %350 : vector<2x32xf32>
    %352 = vector.extract_strided_slice %333 {offsets = [0, 96], sizes = [2, 32], strides = [1, 1]} : vector<2x128xf32> to vector<2x32xf32>
    %cst_191 = arith.constant 5.000000e-01 : f32
    %353 = vector.broadcast %cst_191 : f32 to vector<2x32xf32>
    %354 = arith.mulf %353, %352 : vector<2x32xf32>
    %355 = math.tanh %354 : vector<2x32xf32>
    %cst_192 = arith.constant 1.000000e+00 : f32
    %356 = vector.broadcast %cst_192 : f32 to vector<2x32xf32>
    %357 = arith.addf %356, %355 : vector<2x32xf32>
    %cst_193 = arith.constant 5.000000e-01 : f32
    %358 = vector.broadcast %cst_193 : f32 to vector<2x32xf32>
    %359 = arith.mulf %358, %357 : vector<2x32xf32>
    %c0_194 = arith.constant 0 : index
    %c0_195 = arith.constant 0 : index
    %360 = vector.load %arg9[%c0_194, %c0_195] : memref<2x32xf32, #tpu.memory_space<vmem>>, vector<2x32xf32>
    %361 = arith.mulf %349, %360 : vector<2x32xf32>
    %362 = arith.mulf %341, %351 : vector<2x32xf32>
    %363 = arith.addf %361, %362 : vector<2x32xf32>
    %364 = math.tanh %363 : vector<2x32xf32>
    %365 = arith.mulf %359, %364 : vector<2x32xf32>
    %c0_196 = arith.constant 0 : index
    %c0_197 = arith.constant 0 : index
    %366 = vector.load %arg9[%c0_196, %c0_197] : memref<2x32xf32, #tpu.memory_space<vmem>>, vector<2x32xf32>
    tpu.vector_store %arg9[%c0_196, %c0_197], %363 {strides = array<i32>} : memref<2x32xf32, #tpu.memory_space<vmem>>, vector<2x32xf32>,
    %c0_198 = arith.constant 0 : index
    %c0_199 = arith.constant 0 : index
    %367 = vector.load %arg8[%c0_198, %c0_199] : memref<2x32xf32, #tpu.memory_space<vmem>>, vector<2x32xf32>
    tpu.vector_store %arg8[%c0_198, %c0_199], %365 {strides = array<i32>} : memref<2x32xf32, #tpu.memory_space<vmem>>, vector<2x32xf32>,
    %368 = vector.shape_cast %365 : vector<2x32xf32> to vector<1x2x32xf32>
    %369 = arith.index_cast %c7_i32 : i32 to index
    %c0_200 = arith.constant 0 : index
    %c0_201 = arith.constant 0 : index
    %370 = vector.load %arg6[%369, %c0_200, %c0_201] : memref<8x2x32xf32, #tpu.memory_space<vmem>>, vector<1x2x32xf32>
    tpu.vector_store %arg6[%369, %c0_200, %c0_201], %368 {strides = array<i32>} : memref<8x2x32xf32, #tpu.memory_space<vmem>>, vector<1x2x32xf32>,
    %c8_i32 = arith.constant 8 : i32
    return
  }
  func.func @transform_0(%arg0: i32, %arg1: i32) -> (i32, i32, i32) {
    %c0_i32 = arith.constant 0 : i32
    %c0_i32_0 = arith.constant 0 : i32
    return %arg1, %arg0, %c0_i32 : i32, i32, i32
  }
  func.func @transform_1(%arg0: i32, %arg1: i32) -> (i32, i32) {
    %c0_i32 = arith.constant 0 : i32
    %c0_i32_0 = arith.constant 0 : i32
    %c0_i32_1 = arith.constant 0 : i32
    return %c0_i32, %c0_i32_0 : i32, i32
  }
  func.func @transform_2(%arg0: i32, %arg1: i32) -> (i32, i32) {
    %c0_i32 = arith.constant 0 : i32
    %c0_i32_0 = arith.constant 0 : i32
    %c0_i32_1 = arith.constant 0 : i32
    return %c0_i32, %c0_i32_0 : i32, i32
  }
  func.func @transform_3(%arg0: i32, %arg1: i32) -> (i32, i32) {
    %c0_i32 = arith.constant 0 : i32
    %c0_i32_0 = arith.constant 0 : i32
    %c0_i32_1 = arith.constant 0 : i32
    return %c0_i32, %c0_i32_0 : i32, i32
  }
  func.func @transform_4(%arg0: i32, %arg1: i32) -> (i32, i32, i32) {
    %c0_i32 = arith.constant 0 : i32
    %c0_i32_0 = arith.constant 0 : i32
    return %arg1, %arg0, %c0_i32 : i32, i32, i32
  }
}

module attributes {stable_mosaic.version = 11 : i64} {
  func.func @kernel(%arg0: i32, %arg1: memref<16x32xf32, #tpu.memory_space<vmem>>, %arg2: memref<32x96xf32, #tpu.memory_space<vmem>>, %arg3: memref<1x96xf32, #tpu.memory_space<vmem>>, %arg4: memref<3x32x32xf32, #tpu.memory_space<vmem>>, %arg5: memref<3x1x32xf32, #tpu.memory_space<vmem>>, %arg6: memref<3x16x32xf32, #tpu.memory_space<vmem>>) attributes {dimension_semantics = [#tpu.dimension_semantics<parallel>], iteration_bounds = array<i64: 1>, scalar_prefetch = 0 : i64, scratch_operands = 0 : i64, tpu.core_type = #tpu.core_type<tc>, window_params = [{transform_indices = @transform_0, window_bounds = array<i64: 16, 32>}, {pipeline_mode = #tpu.pipeline_mode<synchronous>, transform_indices = @transform_1, window_bounds = array<i64: 32, 96>}, {pipeline_mode = #tpu.pipeline_mode<synchronous>, transform_indices = @transform_2, window_bounds = array<i64: 1, 96>}, {pipeline_mode = #tpu.pipeline_mode<synchronous>, transform_indices = @transform_3, window_bounds = array<i64: 3, 32, 32>}, {pipeline_mode = #tpu.pipeline_mode<synchronous>, transform_indices = @transform_4, window_bounds = array<i64: 3, 1, 32>}, {transform_indices = @transform_5, window_bounds = array<i64: 3, 16, 32>}]} {
    %c0 = arith.constant 0 : index
    %c0_0 = arith.constant 0 : index
    %0 = vector.load %arg1[%c0, %c0_0] : memref<16x32xf32, #tpu.memory_space<vmem>>, vector<16x32xf32>
    %c0_1 = arith.constant 0 : index
    %c0_2 = arith.constant 0 : index
    %1 = vector.load %arg2[%c0_1, %c0_2] : memref<32x96xf32, #tpu.memory_space<vmem>>, vector<32x96xf32>
    %cst = arith.constant dense<0.000000e+00> : vector<16x96xf32>
    %2 = tpu.matmul %0, %1, %cst {dimension_numbers = #tpu.dot_dimension_numbers<[1], [0], [0], [1], [0, 0, 1, 1], [], []>} : vector<16x32xf32>, vector<32x96xf32>, vector<16x96xf32> -> vector<16x96xf32>
    %c0_3 = arith.constant 0 : index
    %c0_4 = arith.constant 0 : index
    %3 = vector.load %arg3[%c0_3, %c0_4] : memref<1x96xf32, #tpu.memory_space<vmem>>, vector<1x96xf32>
    %4 = vector.broadcast %3 : vector<1x96xf32> to vector<16x96xf32>
    %5 = arith.addf %2, %4 : vector<16x96xf32>
    %cst_5 = arith.constant 5.000000e-01 : f32
    %6 = vector.broadcast %cst_5 : f32 to vector<16x96xf32>
    %7 = arith.mulf %6, %5 : vector<16x96xf32>
    %cst_6 = arith.constant 0.707106769 : f32
    %8 = vector.broadcast %cst_6 : f32 to vector<16x96xf32>
    %9 = arith.mulf %5, %8 : vector<16x96xf32>
    %10 = math.erf %9 : vector<16x96xf32>
    %cst_7 = arith.constant 1.000000e+00 : f32
    %11 = vector.broadcast %cst_7 : f32 to vector<16x96xf32>
    %12 = arith.addf %11, %10 : vector<16x96xf32>
    %13 = arith.mulf %7, %12 : vector<16x96xf32>
    %14 = vector.extract_strided_slice %13 {offsets = [0, 0], sizes = [16, 32], strides = [1, 1]} : vector<16x96xf32> to vector<16x32xf32>
    %c0_8 = arith.constant 0 : index
    %c0_9 = arith.constant 0 : index
    %c0_10 = arith.constant 0 : index
    %15 = vector.load %arg4[%c0_8, %c0_9, %c0_10] : memref<3x32x32xf32, #tpu.memory_space<vmem>>, vector<1x32x32xf32>
    %16 = vector.shape_cast %15 : vector<1x32x32xf32> to vector<32x32xf32>
    %cst_11 = arith.constant dense<0.000000e+00> : vector<16x32xf32>
    %17 = tpu.matmul %14, %16, %cst_11 {dimension_numbers = #tpu.dot_dimension_numbers<[1], [0], [0], [1], [0, 0, 1, 1], [], []>} : vector<16x32xf32>, vector<32x32xf32>, vector<16x32xf32> -> vector<16x32xf32>
    %c0_12 = arith.constant 0 : index
    %c0_13 = arith.constant 0 : index
    %c0_14 = arith.constant 0 : index
    %18 = vector.load %arg5[%c0_12, %c0_13, %c0_14] : memref<3x1x32xf32, #tpu.memory_space<vmem>>, vector<1x1x32xf32>
    %19 = vector.shape_cast %18 : vector<1x1x32xf32> to vector<1x32xf32>
    %20 = vector.broadcast %19 : vector<1x32xf32> to vector<16x32xf32>
    %21 = arith.addf %17, %20 : vector<16x32xf32>
    %c0_15 = arith.constant 0 : index
    %c0_16 = arith.constant 0 : index
    %c0_17 = arith.constant 0 : index
    %22 = vector.load %arg6[%c0_15, %c0_16, %c0_17] : memref<3x16x32xf32, #tpu.memory_space<vmem>>, vector<1x16x32xf32>
    %23 = vector.shape_cast %22 : vector<1x16x32xf32> to vector<16x32xf32>
    %24 = vector.shape_cast %21 : vector<16x32xf32> to vector<1x16x32xf32>
    tpu.vector_store %arg6[%c0_15, %c0_16, %c0_17], %24 {strides = array<i32>} : memref<3x16x32xf32, #tpu.memory_space<vmem>>, vector<1x16x32xf32>,
    %25 = vector.extract_strided_slice %13 {offsets = [0, 32], sizes = [16, 32], strides = [1, 1]} : vector<16x96xf32> to vector<16x32xf32>
    %c1 = arith.constant 1 : index
    %c0_18 = arith.constant 0 : index
    %c0_19 = arith.constant 0 : index
    %26 = vector.load %arg4[%c1, %c0_18, %c0_19] : memref<3x32x32xf32, #tpu.memory_space<vmem>>, vector<1x32x32xf32>
    %27 = vector.shape_cast %26 : vector<1x32x32xf32> to vector<32x32xf32>
    %cst_20 = arith.constant dense<0.000000e+00> : vector<16x32xf32>
    %28 = tpu.matmul %25, %27, %cst_20 {dimension_numbers = #tpu.dot_dimension_numbers<[1], [0], [0], [1], [0, 0, 1, 1], [], []>} : vector<16x32xf32>, vector<32x32xf32>, vector<16x32xf32> -> vector<16x32xf32>
    %c1_21 = arith.constant 1 : index
    %c0_22 = arith.constant 0 : index
    %c0_23 = arith.constant 0 : index
    %29 = vector.load %arg5[%c1_21, %c0_22, %c0_23] : memref<3x1x32xf32, #tpu.memory_space<vmem>>, vector<1x1x32xf32>
    %30 = vector.shape_cast %29 : vector<1x1x32xf32> to vector<1x32xf32>
    %31 = vector.broadcast %30 : vector<1x32xf32> to vector<16x32xf32>
    %32 = arith.addf %28, %31 : vector<16x32xf32>
    %c1_24 = arith.constant 1 : index
    %c0_25 = arith.constant 0 : index
    %c0_26 = arith.constant 0 : index
    %33 = vector.load %arg6[%c1_24, %c0_25, %c0_26] : memref<3x16x32xf32, #tpu.memory_space<vmem>>, vector<1x16x32xf32>
    %34 = vector.shape_cast %33 : vector<1x16x32xf32> to vector<16x32xf32>
    %35 = vector.shape_cast %32 : vector<16x32xf32> to vector<1x16x32xf32>
    tpu.vector_store %arg6[%c1_24, %c0_25, %c0_26], %35 {strides = array<i32>} : memref<3x16x32xf32, #tpu.memory_space<vmem>>, vector<1x16x32xf32>,
    %36 = vector.extract_strided_slice %13 {offsets = [0, 64], sizes = [16, 32], strides = [1, 1]} : vector<16x96xf32> to vector<16x32xf32>
    %c2 = arith.constant 2 : index
    %c0_27 = arith.constant 0 : index
    %c0_28 = arith.constant 0 : index
    %37 = vector.load %arg4[%c2, %c0_27, %c0_28] : memref<3x32x32xf32, #tpu.memory_space<vmem>>, vector<1x32x32xf32>
    %38 = vector.shape_cast %37 : vector<1x32x32xf32> to vector<32x32xf32>
    %cst_29 = arith.constant dense<0.000000e+00> : vector<16x32xf32>
    %39 = tpu.matmul %36, %38, %cst_29 {dimension_numbers = #tpu.dot_dimension_numbers<[1], [0], [0], [1], [0, 0, 1, 1], [], []>} : vector<16x32xf32>, vector<32x32xf32>, vector<16x32xf32> -> vector<16x32xf32>
    %c2_30 = arith.constant 2 : index
    %c0_31 = arith.constant 0 : index
    %c0_32 = arith.constant 0 : index
    %40 = vector.load %arg5[%c2_30, %c0_31, %c0_32] : memref<3x1x32xf32, #tpu.memory_space<vmem>>, vector<1x1x32xf32>
    %41 = vector.shape_cast %40 : vector<1x1x32xf32> to vector<1x32xf32>
    %42 = vector.broadcast %41 : vector<1x32xf32> to vector<16x32xf32>
    %43 = arith.addf %39, %42 : vector<16x32xf32>
    %c2_33 = arith.constant 2 : index
    %c0_34 = arith.constant 0 : index
    %c0_35 = arith.constant 0 : index
    %44 = vector.load %arg6[%c2_33, %c0_34, %c0_35] : memref<3x16x32xf32, #tpu.memory_space<vmem>>, vector<1x16x32xf32>
    %45 = vector.shape_cast %44 : vector<1x16x32xf32> to vector<16x32xf32>
    %46 = vector.shape_cast %43 : vector<16x32xf32> to vector<1x16x32xf32>
    tpu.vector_store %arg6[%c2_33, %c0_34, %c0_35], %46 {strides = array<i32>} : memref<3x16x32xf32, #tpu.memory_space<vmem>>, vector<1x16x32xf32>,
    return
  }
  func.func @transform_0(%arg0: i32) -> (i32, i32) {
    %c0_i32 = arith.constant 0 : i32
    %c0_i32_0 = arith.constant 0 : i32
    return %arg0, %c0_i32 : i32, i32
  }
  func.func @transform_1(%arg0: i32) -> (i32, i32) {
    %c0_i32 = arith.constant 0 : i32
    %c0_i32_0 = arith.constant 0 : i32
    %c0_i32_1 = arith.constant 0 : i32
    return %c0_i32, %c0_i32_0 : i32, i32
  }
  func.func @transform_2(%arg0: i32) -> (i32, i32) {
    %c0_i32 = arith.constant 0 : i32
    %c0_i32_0 = arith.constant 0 : i32
    %c0_i32_1 = arith.constant 0 : i32
    return %c0_i32, %c0_i32_0 : i32, i32
  }
  func.func @transform_3(%arg0: i32) -> (i32, i32, i32) {
    %c0_i32 = arith.constant 0 : i32
    %c0_i32_0 = arith.constant 0 : i32
    %c0_i32_1 = arith.constant 0 : i32
    %c0_i32_2 = arith.constant 0 : i32
    return %c0_i32, %c0_i32_0, %c0_i32_1 : i32, i32, i32
  }
  func.func @transform_4(%arg0: i32) -> (i32, i32, i32) {
    %c0_i32 = arith.constant 0 : i32
    %c0_i32_0 = arith.constant 0 : i32
    %c0_i32_1 = arith.constant 0 : i32
    %c0_i32_2 = arith.constant 0 : i32
    return %c0_i32, %c0_i32_0, %c0_i32_1 : i32, i32, i32
  }
  func.func @transform_5(%arg0: i32) -> (i32, i32, i32) {
    %c0_i32 = arith.constant 0 : i32
    %c0_i32_0 = arith.constant 0 : i32
    %c0_i32_1 = arith.constant 0 : i32
    return %c0_i32, %arg0, %c0_i32_0 : i32, i32, i32
  }
}

</mosaic_0001>

<bundles_post_ra>
// kernel: lstm_layer_forward.3
= control target key start
LH: loop header
LB: loop body
LE: loop exit
PB: predicated region body
PF: predicated region fallthrough
CT: control target
= control target key end

     0   :  { %vm30_vm0 = vcmask 261120   ;;  %s313_s20 = smov 96   ;;  %s314_s21 = smov 64   ;;  %s473_s1 = inlined_call_operand.vmem [shape: f32[32,96], index: 1, kind: input, shape index: {}]   ;;  %s474_s2 = inlined_call_operand.vmem [shape: f32[1,96], index: 2, kind: input, shape index: {}]   ;;  %s475_s0 = inlined_call_operand.vmem [shape: f32[16,32], index: 0, kind: input, shape index: {}]   ;;  %s476_s3 = inlined_call_operand.vmem [shape: f32[3,32,32], index: 3, kind: input, shape index: {}]   ;;  %s477_s4 = inlined_call_operand.vmem [shape: f32[3,1,32], index: 4, kind: input, shape index: {}]   ;;  %s478_s5 = inlined_call_operand.vmem [shape: f32[3,16,32], index: 5, kind: output, shape index: {}]  }
   0x1   :  { %v25_v0 = vld [vmem:[%s473_s1 + $0x18] sm:$0xff]  ;;  %v24_v1 = vld [vmem:[%s473_s1 + $0x10] sm:$0xff]  ;;  %v23_v2 = vld [vmem:[%s473_s1 + $0x8] sm:$0xff] }
   0x2   :  { %49 = vmatpush.msra.mxu0 %v25_v0  ;;  %v22_v3 = vld [vmem:[%s473_s1] sm:$0xff]  ;;  %v21_v5 = vld [vmem:[%s475_s0 + $0x8] sm:$0xff]  ;;  %v151_v25 = vld [vmem:[%s476_s3 + $0x18] sm:$0xff] }
   0x3   :  { %v20_v4 = vld [vmem:[%s475_s0] sm:$0xff]  ;;  %174 = vmatpush.msra.mxu1 %v151_v25  ;;  %v150_v29 = vld [vmem:[%s476_s3 + $0x10] sm:$0xff]  ;;  %v149_v34 = vld [vmem:[%s476_s3 + $0x8] sm:$0xff] }
   0x4   :  { %50 = vmatpush.msra.mxu0 %v24_v1  ;;  %v305_v6 = vld [vmem:[%s474_s2] ss:$0 sm:$0xff]  ;;  %v288_v61 = vld [vmem:[%s476_s3 + $0x38] sm:$0xff]  ;;  %v287_v62 = vld [vmem:[%s476_s3 + $0x30] sm:$0xff] }
   0x5   :  { %175 = vmatpush.msra.mxu1 %v150_v29  ;;  %v148_v38 = vld [vmem:[%s476_s3] sm:$0xff]  ;;  %217 = vmatpush.msra.mxu2 %v288_v61 }
   0x6   :  { %51 = vmatpush.msra.mxu0 %v23_v2 }
   0x7   :  { %176 = vmatpush.msra.mxu1 %v149_v34  ;;  %218 = vmatpush.msra.mxu2 %v287_v62 }
   0x8   :  { %52 = vmatpush.msra.mxu0 %v22_v3  ;;  %v286_v3 = vld [vmem:[%s476_s3 + $0x28] sm:$0xff] }
   0x9   :  { %279 = vmatmul.msk.f32.vlgmr.msra.gmra.mxu0 %vm30_vm0, %v20_v4  ;;  %177 = vmatpush.msra.mxu1 %v148_v38 }
   0xa   :  { %219 = vmatpush.msra.mxu2 %v286_v3 }
  0x11   :  { %280 = vmatmul.msk.f32.gmra.mxu0 %vm30_vm0, %v21_v5 }
  0x86   :  { %v54_v7 = vpop.f32.mrf.mxu0 }
  0x87   :  { %v368_v8 = vadd.f32 %v305_v6, %v54_v7 }
  0x89   :  { %v371_v9 = vmul.f32 0.70710677, %v368_v8  ;;  %v60_v25 = vmul.f32 0.5, %v368_v8 }
  0x8b   :  { %v64_v10 = vmul.f32 %v371_v9, %v371_v9 }
  0x8d   :  { %v65_v11 = vmin.f32 %v64_v10, 16.0 }
  0x8e   :  { %v57_v12 = vpop.f32.mrf.mxu0 }
  0x8f   :  { %v66_v13 = vmul.f32 2.1237322e-06, %v65_v11  ;;  %v77_v14 = vmul.f32 3.8918573e-05, %v65_v11  ;;  %v375_v15 = vadd.f32 %v305_v6, %v57_v12  ;;  %v285_v6 = vld [vmem:[%s476_s3 + $0x20] sm:$0xff] }
  0x90   :  { %220 = vmatpush.msra.mxu2 %v285_v6 }
  0x91   :  { %v67_v16 = vadd.f32 0.00028619796, %v66_v13  ;;  %v78_v17 = vadd.f32 0.001143296, %v77_v14  ;;  %v378_v18 = vmul.f32 0.70710677, %v375_v15 }
  0x93   :  { %v68_v19 = vmul.f32 %v67_v16, %v65_v11  ;;  %v79_v20 = vmul.f32 %v78_v17, %v65_v11  ;;  %v104_v21 = vmul.f32 %v378_v18, %v378_v18 }
  0x95   :  { %v80_v22 = vadd.f32 0.014752088, %v79_v20  ;;  %v69_v23 = vadd.f32 0.0036580483, %v68_v19  ;;  %v382_v24 = vmin.f32 %v104_v21, 16.0 }
  0x97   :  { %v81_v26 = vmul.f32 %v80_v22, %v65_v11  ;;  %v106_v27 = vmul.f32 2.1237322e-06, %v382_v24  ;;  %v117_v28 = vmul.f32 3.8918573e-05, %v382_v24  ;;  %v70_v31 = vmul.f32 %v69_v23, %v65_v11 }
  0x99   :  { %v82_v30 = vadd.f32 0.112945676, %v81_v26  ;;  %v107_v32 = vadd.f32 0.00028619796, %v106_v27  ;;  %v118_v33 = vadd.f32 0.001143296, %v117_v28 }
  0x9a   :  { %v71_v40 = vadd.f32 0.05243302, %v70_v31 }
  0x9b   :  { %v83_v35 = vmul.f32 %v82_v30, %v65_v11  ;;  %v108_v36 = vmul.f32 %v107_v32, %v382_v24  ;;  %v119_v37 = vmul.f32 %v118_v33, %v382_v24  ;;  %v61_v33 = vmul.f32 0.5, %v375_v15  ;;  %v295_v15 = vld [vmem:[%s476_s3 + $0x48] sm:$0xff] }
  0x9c   :  { %v72_v46 = vmul.f32 %v71_v40, %v65_v11 }
  0x9d   :  { %v84_v39 = vadd.f32 0.4994258, %v83_v35  ;;  %v120_v41 = vadd.f32 0.014752088, %v119_v37  ;;  %v109_v43 = vadd.f32 0.0036580483, %v108_v36 }
  0x9e   :  { %v73_v50 = vadd.f32 0.18741608, %v72_v46  ;;  %v296_v35 = vld [vmem:[%s476_s3 + $0x50] sm:$0xff]  ;;  %v294_v36 = vld [vmem:[%s476_s3 + $0x40] sm:$0xff] }
  0x9f   :  { %v85_v42 = vmul.f32 %v84_v39, %v65_v11  ;;  %v121_v44 = vmul.f32 %v120_v41, %v382_v24  ;;  %v110_v48 = vmul.f32 %v109_v43, %v382_v24  ;;  %v306_v39 = vld [vmem:[%s477_s4] ss:$0 sm:$0xff]  ;;  %v307_v46 = vld [vmem:[%s477_s4 + $0x1] ss:$0 sm:$0xff] }
  0xa0   :  { %v74_v55 = vmul.f32 %v73_v50, %v65_v11 }
  0xa1   :  { %v86_v45 = vadd.f32 1.0, %v85_v42  ;;  %v122_v47 = vadd.f32 0.112945676, %v121_v44  ;;  %v111_v52 = vadd.f32 0.05243302, %v110_v48 }
  0xa2   :  { %v75_v63 = vadd.f32 1.1283791, %v74_v55 }
  0xa3   :  { %309 = vrcp.f32 %v86_v45  ;;  %v123_v49 = vmul.f32 %v122_v47, %v382_v24  ;;  %v112_v58 = vmul.f32 %v111_v52, %v382_v24  ;;  %v98_v60 = vand.u32 2147483648, %v86_v45 }
  0xa4   :  { %v96_v1 = vand.u32 2147483647, %v86_v45  ;;  %vm92_vm2 = vweird.f32 %v86_v45  ;;  %v76_v10 = vmul.f32 %v75_v63, %v371_v9 }
  0xa5   :  { %v124_v51 = vadd.f32 0.4994258, %v123_v49  ;;  %v113_v2 = vadd.f32 0.18741608, %v112_v58  ;;  %v99_v5 = vor.u32 1.1754944e-38, %v98_v60 }
  0xa6   :  { %vm97_vm4 = vcmp.eq.f32.partialorder %v96_v1, 8.507059e+37  ;;  %v308_v49 = vld [vmem:[%s477_s4 + $0x2] ss:$0 sm:$0xff] }
  0xa7   :  { %v125_v53 = vmul.f32 %v124_v51, %v382_v24  ;;  %v114_v13 = vmul.f32 %v113_v2, %v382_v24 }
  0xa9   :  { %v310_v54 = vpop.eup %309  ;;  %v126_v57 = vadd.f32 1.0, %v125_v53  ;;  %v115_v21 = vadd.f32 1.1283791, %v114_v13 }
  0xaa   :  { %v88_v56 = vmul.f32 %v310_v54, %v86_v45  ;;  %vm93_vm1 = vweird.f32 %v310_v54 }
  0xab   :  { %311 = vrcp.f32 %v126_v57  ;;  %vm94_vm3 = vmor %vm92_vm2, %vm93_vm1  ;;  %v138_v19 = vand.u32 2147483648, %v126_v57  ;;  %v136_v23 = vand.u32 2147483647, %v126_v57  ;;  %vm132_vm6 = vweird.f32 %v126_v57 }
  0xac   :  { %v89_v59 = vsub.f32 1.0, %v88_v56  ;;  %v116_v24 = vmul.f32 %v115_v21, %v378_v18  ;;  %v297_v18 = vld [vmem:[%s476_s3 + $0x58] sm:$0xff] }
  0xad   :  { %v139_v27 = vor.u32 1.1754944e-38, %v138_v19  ;;  %vm137_vm8 = vcmp.eq.f32.partialorder %v136_v23, 8.507059e+37  ;;  %261 = vmatpush.msra.mxu3 %v297_v18 }
  0xae   :  { %v90_v0 = vmul.f32 %v310_v54, %v89_v59 }
  0xaf   :  { %262 = vmatpush.msra.mxu3 %v296_v35 }
  0xb0   :  { %v91_v4 = vadd.f32 %v310_v54, %v90_v0 }
  0xb1   :  { %v312_v7 = vpop.eup %311  ;;  %263 = vmatpush.msra.mxu3 %v295_v15 }
  0xb2   :  { %v95_v11 = vsel %vm94_vm3, %v310_v54, %v91_v4  ;;  %v128_v14 = vmul.f32 %v312_v7, %v126_v57  ;;  %vm133_vm5 = vweird.f32 %v312_v7 }
  0xb3   :  { %v100_v12 = vsel %vm97_vm4, %v99_v5, %v95_v11  ;;  %vm134_vm7 = vmor %vm132_vm6, %vm133_vm5  ;;  %264 = vmatpush.msra.mxu3 %v294_v36 }
  0xb4   :  { %v101_v16 = vmul.f32 %v100_v12, %v76_v10  ;;  %v129_v17 = vsub.f32 1.0, %v128_v14 }
  0xb6   :  { %v281_v20 = vclamps-f32 %v101_v16, 1.0  ;;  %v130_v22 = vmul.f32 %v312_v7, %v129_v17 }
  0xb8   :  { %v144_v26 = vadd.f32 1.0, %v281_v20  ;;  %v131_v9 = vadd.f32 %v312_v7, %v130_v22 }
  0xba   :  { %v146_v28 = vmul.f32 %v144_v26, %v60_v25  ;;  %v135_v29 = vsel %vm134_vm7, %v312_v7, %v131_v9 }
  0xbb   :  { %v140_v30 = vsel %vm137_vm8, %v139_v27, %v135_v29 }
  0xbc   :  { %197 = vrot.lane.b32.xlu0 %v146_v28, %s313_s20  ;;  %283 = vmatmul.msk.f32.vlgmr.msra.gmra.mxu1 %vm30_vm0, %v146_v28  ;;  %v141_v31 = vmul.f32 %v140_v30, %v116_v24 }
  0xbe   :  { %v282_v32 = vclamps-f32 %v141_v31, 1.0 }
  0xc0   :  { %v145_v8 = vadd.f32 1.0, %v282_v32 }
  0xc2   :  { %v147_v34 = vmul.f32 %v145_v8, %v61_v33 }
  0xc4   :  { %241 = vrot.lane.b32.xlu0 %v146_v28, %s314_s21  ;;  %199 = vrot.lane.b32.xlu1 %v147_v34, %s313_s20 }
  0xc5   :  { %284 = vmatmul.msk.f32.gmra.mxu1 %vm30_vm0, %v147_v34 }
  0xcc   :  { %243 = vrot.lane.b32.xlu1 %v147_v34, %s314_s21 }
 0x12e   :  { %v198_v37 = vpop.permute.xlu0 %197 }
 0x12f   :  { %290 = vmatmul.msk.f32.vlgmr.msra.gmra.mxu2 %vm30_vm0, %v198_v37 }
 0x136   :  { %v242_v38 = vpop.permute.xlu0 %241  ;;  %v200_v40 = vpop.permute.xlu1 %199 }
 0x137   :  { %299 = vmatmul.msk.f32.vlgmr.msra.gmra.mxu3 %vm30_vm0, %v242_v38  ;;  %291 = vmatmul.msk.f32.gmra.mxu2 %vm30_vm0, %v200_v40 }
 0x139   :  { %v179_v41 = vpop.f32.mrf.mxu1 }
 0x13a   :  { %v180_v42 = vadd.f32 %v306_v39, %v179_v41 }
 0x13c   :  { %185 = vst.msk [vmem:[%s478_s5] sm:$0xff] %vm30_vm0, %v180_v42 }
 0x13e   :  { %v244_v43 = vpop.permute.xlu1 %243 }
 0x13f   :  { %300 = vmatmul.msk.f32.gmra.mxu3 %vm30_vm0, %v244_v43 }
 0x142   :  { %v182_v44 = vpop.f32.mrf.mxu1 }
 0x143   :  { %v183_v45 = vadd.f32 %v306_v39, %v182_v44 }
 0x145   :  { %186 = vst.msk [vmem:[%s478_s5 + $0x8] sm:$0xff] %vm30_vm0, %v183_v45 }
 0x1b2   :  { %v222_v47 = vpop.f32.mrf.mxu2 }
 0x1b3   :  { %v223_v48 = vadd.f32 %v307_v46, %v222_v47 }
 0x1b5   :  { %292 = vst.msk [vmem:[%s478_s5 + $0x10] sm:$0xff] %vm30_vm0, %v223_v48 }
 0x1ba   :  { %v266_v50 = vpop.f32.mrf.mxu3  ;;  %v225_v51 = vpop.f32.mrf.mxu2 }
 0x1bb   :  { %v267_v52 = vadd.f32 %v308_v49, %v266_v50  ;;  %v226_v53 = vadd.f32 %v307_v46, %v225_v51 }
 0x1bd   :  { %301 = vst.msk [vmem:[%s478_s5 + $0x20] sm:$0xff] %vm30_vm0, %v267_v52 }
 0x1be   :  { %293 = vst.msk [vmem:[%s478_s5 + $0x18] sm:$0xff] %vm30_vm0, %v226_v53 }
 0x1c2   :  { %v269_v54 = vpop.f32.mrf.mxu3 }
 0x1c3   :  { %v270_v55 = vadd.f32 %v308_v49, %v269_v54 }
 0x1c5   :  { %302 = vst.msk [vmem:[%s478_s5 + $0x28] sm:$0xff] %vm30_vm0, %v270_v55 }

// kernel: lstm_layer_forward.2
= control target key start
LH: loop header
LB: loop body
LE: loop exit
PB: predicated region body
PF: predicated region fallthrough
CT: control target
= control target key end

     0   :  { %vm21_vm0 = vcmask 254976   ;;  %v728_v2 = vmov 0.0   ;;  %vm65_vm1 = vcmask 261120   ;;  %s729_s13 = smov 64   ;;  %s730_s14 = smov 32   ;;  %s920_s1 = inlined_call_operand.vmem [shape: f32[32,128], index: 1, kind: input, shape index: {}]   ;;  %s921_s0 = inlined_call_operand.vmem [shape: f32[8,2,32], index: 0, kind: input, shape index: {}]   ;;  %s922_s2 = inlined_call_operand.vmem [shape: f32[32,128], index: 2, kind: input, shape index: {}]   ;;  %s923_s3 = inlined_call_operand.vmem [shape: f32[1,128], index: 3, kind: input, shape index: {}]   ;;  %s924_s4 = inlined_call_operand.vmem [shape: f32[8,2,32], index: 4, kind: output, shape index: {}]  }
   0x1   :  { %v35_v0 = vld [vmem:[%s920_s1 + $0x18] sm:$0xff]  ;;  %v34_v1 = vld [vmem:[%s920_s1 + $0x10] sm:$0xff]  ;;  %22 = vst.msk [vmem:[#allocation3] sm:$0x3] %vm21_vm0, %v728_v2  ;;  %v33_v3 = vld [vmem:[%s920_s1 + $0x8] sm:$0xff] }
   0x2   :  { %82 = vmatpush.msra.mxu0 %v35_v0  ;;  %v24_v4 = vld [vmem:[%s921_s0] sm:$0x3]  ;;  %v25_v5 = vld [vmem:[%s921_s0 + $0x2] sm:$0x3]  ;;  %v26_v6 = vld [vmem:[%s921_s0 + $0x4] sm:$0x3] }
   0x3   :  { %v27_v7 = vld [vmem:[%s921_s0 + $0x6] sm:$0x3]  ;;  %48 = vst [vmem:[#allocation1] ss:$4 sm:$0xff] %v24_v4  ;;  %v100_v8 = vld [vmem:[%s922_s2 + $0x18] sm:$0xff]  ;;  %v99_v9 = vld [vmem:[%s922_s2 + $0x10] sm:$0xff] }
   0x4   :  { %83 = vmatpush.msra.mxu0 %v34_v1  ;;  %50 = vst [vmem:[#allocation1 + $0x1] ss:$4 sm:$0xff] %v25_v5  ;;  %v32_v10 = vld [vmem:[%s920_s1] sm:$0xff]  ;;  %116 = vmatpush.msra.mxu1 %v100_v8  ;;  %v98_v11 = vld [vmem:[%s922_s2 + $0x8] sm:$0xff] }
   0x5   :  { %52 = vst [vmem:[#allocation1 + $0x2] ss:$4 sm:$0xff] %v26_v6  ;;  %186 = vmatpush.msra.mxu2 %v100_v8  ;;  %256 = vmatpush.msra.mxu3 %v100_v8  ;;  %v97_v12 = vld [vmem:[%s922_s2] sm:$0xff] }
   0x6   :  { %84 = vmatpush.msra.mxu0 %v33_v3  ;;  %54 = vst [vmem:[#allocation1 + $0x3] ss:$4 sm:$0xff] %v27_v7  ;;  %117 = vmatpush.msra.mxu1 %v99_v9  ;;  %v800_v15 = vld [vmem:[%s923_s3] ss:$0 sm:$0xff]  ;;  %s731_s3 = smov 96  }
   0x7   :  { %23 = vst.msk [vmem:[#allocation4] sm:$0x3] %vm21_vm0, %v728_v2  ;;  %187 = vmatpush.msra.mxu2 %v99_v9  ;;  %257 = vmatpush.msra.mxu3 %v99_v9 }
   0x8   :  { %85 = vmatpush.msra.mxu0 %v32_v10  ;;  %118 = vmatpush.msra.mxu1 %v98_v11  ;;  %v96_v13 = vld [vmem:[#allocation3] sm:$0x3] }
   0x9   :  { %188 = vmatpush.msra.mxu2 %v98_v11  ;;  %258 = vmatpush.msra.mxu3 %v98_v11 }
   0xa   :  { %536 = vmatpush.msrb.mxu0 %v100_v8  ;;  %119 = vmatpush.msra.mxu1 %v97_v12 }
   0xb   :  { %189 = vmatpush.msra.mxu2 %v97_v12  ;;  %660 = vmatmul.msk.f32.vlgmr.msra.gmra.mxu1 %vm65_vm1, %v96_v13 }
   0xc   :  { %259 = vmatpush.msra.mxu3 %v97_v12  ;;  %326 = vmatpush.msrb.mxu1 %v100_v8 }
   0xd   :  { %v63_v14 = vld.sshfl [vmem:[#allocation1] sm:$0xff pattern:$0x73625140]  ;;  %396 = vmatpush.msrb.mxu2 %v100_v8  ;;  %537 = vmatpush.msrb.mxu0 %v99_v9 }
   0xe   :  { %658 = vmatmul.msk.f32.vlgmr.msra.gmra.mxu0 %vm65_vm1, %v63_v14  ;;  %466 = vmatpush.msrb.mxu3 %v100_v8  ;;  %v130_v22 = vld [vmem:[#allocation4] sm:$0x3] }
   0xf   :  { %327 = vmatpush.msrb.mxu1 %v99_v9  ;;  %397 = vmatpush.msrb.mxu2 %v99_v9 }
  0x10   :  { %467 = vmatpush.msrb.mxu3 %v99_v9  ;;  %538 = vmatpush.msrb.mxu0 %v98_v11 }
  0x11   :  { %328 = vmatpush.msrb.mxu1 %v98_v11  ;;  %398 = vmatpush.msrb.mxu2 %v98_v11 }
  0x12   :  { %468 = vmatpush.msrb.mxu3 %v98_v11  ;;  %539 = vmatpush.msrb.mxu0 %v97_v12 }
  0x13   :  { %329 = vmatpush.msrb.mxu1 %v97_v12  ;;  %399 = vmatpush.msrb.mxu2 %v97_v12 }
  0x14   :  { %469 = vmatpush.msrb.mxu3 %v97_v12 }
  0x15   :  { %606 = vmatpush.msra.mxu1 %v100_v8 }
  0x17   :  { %607 = vmatpush.msra.mxu1 %v99_v9 }
  0x19   :  { %608 = vmatpush.msra.mxu1 %v98_v11 }
  0x1b   :  { %609 = vmatpush.msra.mxu1 %v97_v12 }
  0x88   :  { %v121_v18 = vpop.f32.mrf.mxu1 }
  0x8b   :  { %v87_v16 = vpop.f32.mrf.mxu0 }
  0x8c   :  { %v88_v17 = vadd.f32 %v800_v15, %v87_v16 }
  0x8e   :  { %93 = vst [vmem:[#allocation2] sm:$0xff] %v88_v17 }
  0x95   :  { %v95_v19 = vld [vmem:[#allocation2] sm:$0x3]  ;;  %v165_v40 = vld [vmem:[#allocation2 + $0x2] sm:$0x3]  ;;  %v235_v61 = vld [vmem:[#allocation2 + $0x4] sm:$0x3] }
  0x96   :  { %v124_v20 = vadd.f32 %v121_v18, %v95_v19  ;;  %v305_v19 = vld [vmem:[#allocation2 + $0x6] sm:$0x3] }
  0x98   :  { %680 = vtanh.f32 %v124_v20  ;;  %v125_v23 = vmul.f32 0.5, %v124_v20 }
  0x9a   :  { %682 = vtanh.f32 %v125_v23 }
  0x9e   :  { %v681_v21 = vpop.eup %680 }
  0x9f   :  { %137 = vrot.lane.b32.xlu0 %v681_v21, %s729_s13 }
  0xa0   :  { %v683_v24 = vpop.eup %682 }
  0xa1   :  { %v127_v25 = vadd.f32 1.0, %v683_v24 }
  0xa3   :  { %v128_v26 = vmul.f32 0.5, %v127_v25 }
  0xa7   :  { %132 = vrot.lane.b32.xlu0 %v130_v22, %s730_s14 }
 0x111   :  { %v138_v27 = vpop.permute.xlu0 %137 }
 0x112   :  { %v140_v28 = vmul.f32 %v138_v27, %v128_v26 }
 0x114   :  { %142 = vrot.lane.b32.xlu1 %v140_v28, %s730_s14 }
 0x119   :  { %v133_v29 = vpop.permute.xlu0 %132 }
 0x11a   :  { %v135_v30 = vmul.f32 %v133_v29, %v128_v26 }
 0x186   :  { %v143_v31 = vpop.permute.xlu1 %142 }
 0x187   :  { %v145_v32 = vadd.f32 %v143_v31, %v135_v30 }
 0x189   :  { %684 = vtanh.f32 %v145_v32 }
 0x18f   :  { %v685_v33 = vpop.eup %684 }
 0x190   :  { %148 = vrot.lane.b32.xlu1 %v685_v33, %s729_s13 }
 0x202   :  { %v149_v34 = vpop.permute.xlu1 %148 }
 0x203   :  { %v151_v35 = vmul.f32 %v149_v34, %v128_v26 }
 0x205   :  { %159 = vrot.lane.b32.xlu2 %v151_v35, %s730_s14 }
 0x20d   :  { %153 = vrot.lane.b32.xlu2 %v145_v32, %s731_s3 }
 0x25f   :  { %v160_v36 = vpop.permute.xlu2 %159 }
 0x260   :  { %162 = vst.msk [vmem:[#allocation3] sm:$0x3] %vm21_vm0, %v160_v36 }
 0x261   :  { %163 = vst.msk [vmem:[%s924_s4] sm:$0x3] %vm21_vm0, %v160_v36 }
 0x267   :  { %v154_v37 = vpop.permute.xlu2 %153  ;;  %v166_v38 = vld [vmem:[#allocation3] sm:$0x3] }
 0x268   :  { %157 = vst.msk [vmem:[#allocation4] sm:$0x3] %vm21_vm0, %v154_v37  ;;  %661 = vmatmul.msk.f32.vlgmr.msra.gmra.mxu2 %vm65_vm1, %v166_v38  ;;  %v28_v38 = vld [vmem:[%s921_s0 + $0x8] sm:$0x3] }
 0x269   :  { %56 = vst [vmem:[#allocation1 + $0x20] ss:$4 sm:$0xff] %v28_v38 }
 0x26f   :  { %v200_v39 = vld [vmem:[#allocation4] sm:$0x3] }
 0x270   :  { %202 = vrot.lane.b32.xlu1 %v200_v39, %s730_s14  ;;  %v29_v39 = vld [vmem:[%s921_s0 + $0xa] sm:$0x3] }
 0x271   :  { %58 = vst [vmem:[#allocation1 + $0x21] ss:$4 sm:$0xff] %v29_v39 }
 0x2e2   :  { %v203_v50 = vpop.permute.xlu1 %202 }
 0x2eb   :  { %v191_v41 = vpop.f32.mrf.mxu2 }
 0x2ec   :  { %v194_v42 = vadd.f32 %v191_v41, %v165_v40  ;;  %v30_v40 = vld [vmem:[%s921_s0 + $0xc] sm:$0x3]  ;;  %v31_v41 = vld [vmem:[%s921_s0 + $0xe] sm:$0x3] }
 0x2ed   :  { %60 = vst [vmem:[#allocation1 + $0x22] ss:$4 sm:$0xff] %v30_v40 }
 0x2ee   :  { %686 = vtanh.f32 %v194_v42  ;;  %v195_v44 = vmul.f32 0.5, %v194_v42  ;;  %62 = vst [vmem:[#allocation1 + $0x23] ss:$4 sm:$0xff] %v31_v41 }
 0x2f0   :  { %688 = vtanh.f32 %v195_v44 }
 0x2f4   :  { %v687_v43 = vpop.eup %686 }
 0x2f5   :  { %207 = vrot.lane.b32.xlu0 %v687_v43, %s729_s13  ;;  %v64_v42 = vld.sshfl [vmem:[#allocation1 + $0x20] sm:$0xff pattern:$0x73625140] }
 0x2f6   :  { %v689_v45 = vpop.eup %688  ;;  %659 = vmatmul.msk.f32.gmra.mxu0 %vm65_vm1, %v64_v42 }
 0x2f7   :  { %v197_v46 = vadd.f32 1.0, %v689_v45 }
 0x2f9   :  { %v198_v47 = vmul.f32 0.5, %v197_v46 }
 0x2fb   :  { %v205_v51 = vmul.f32 %v203_v50, %v198_v47 }
 0x367   :  { %v208_v48 = vpop.permute.xlu0 %207 }
 0x368   :  { %v210_v49 = vmul.f32 %v208_v48, %v198_v47 }
 0x36a   :  { %212 = vrot.lane.b32.xlu2 %v210_v49, %s730_s14 }
 0x373   :  { %v90_v45 = vpop.f32.mrf.mxu0 }
 0x374   :  { %v91_v46 = vadd.f32 %v800_v15, %v90_v45 }
 0x376   :  { %94 = vst [vmem:[#allocation2 + $0x8] sm:$0xff] %v91_v46 }
 0x37d   :  { %v585_v46 = vld [vmem:[#allocation2 + $0xe] sm:$0x3] }
 0x3c4   :  { %v213_v52 = vpop.permute.xlu2 %212 }
 0x3c5   :  { %v215_v53 = vadd.f32 %v213_v52, %v205_v51 }
 0x3c7   :  { %690 = vtanh.f32 %v215_v53  ;;  %223 = vrot.lane.b32.xlu2 %v215_v53, %s731_s3 }
 0x3cd   :  { %v691_v54 = vpop.eup %690 }
 0x3ce   :  { %218 = vrot.lane.b32.xlu0 %v691_v54, %s729_s13 }
 0x421   :  { %v224_v55 = vpop.permute.xlu2 %223 }
 0x422   :  { %226 = vst.msk [vmem:[#allocation4] sm:$0x3] %vm21_vm0, %v224_v55 }
 0x429   :  { %v270_v58 = vld [vmem:[#allocation4] sm:$0x3] }
 0x440   :  { %v219_v56 = vpop.permute.xlu0 %218 }
 0x441   :  { %v221_v57 = vmul.f32 %v219_v56, %v198_v47  ;;  %v375_v47 = vld [vmem:[#allocation2 + $0x8] sm:$0x3] }
 0x443   :  { %228 = vrot.lane.b32.xlu1 %v221_v57, %s730_s14 }
 0x44b   :  { %272 = vrot.lane.b32.xlu1 %v270_v58, %s730_s14 }
 0x4b5   :  { %v229_v59 = vpop.permute.xlu1 %228 }
 0x4b6   :  { %231 = vst.msk [vmem:[#allocation3] sm:$0x3] %vm21_vm0, %v229_v59 }
 0x4b7   :  { %662 = vst.msk [vmem:[%s924_s4 + $0x2] sm:$0x3] %vm21_vm0, %v229_v59 }
 0x4bd   :  { %v236_v60 = vld [vmem:[#allocation3] sm:$0x3]  ;;  %v273_v7 = vpop.permute.xlu1 %272 }
 0x4be   :  { %663 = vmatmul.msk.f32.vlgmr.msra.gmra.mxu3 %vm65_vm1, %v236_v60 }
 0x541   :  { %v261_v62 = vpop.f32.mrf.mxu3 }
 0x542   :  { %v264_v63 = vadd.f32 %v261_v62, %v235_v61 }
 0x544   :  { %692 = vtanh.f32 %v264_v63  ;;  %v265_v1 = vmul.f32 0.5, %v264_v63 }
 0x546   :  { %694 = vtanh.f32 %v265_v1 }
 0x54a   :  { %v693_v0 = vpop.eup %692 }
 0x54b   :  { %277 = vrot.lane.b32.xlu0 %v693_v0, %s729_s13 }
 0x54c   :  { %v695_v2 = vpop.eup %694 }
 0x54d   :  { %v267_v3 = vadd.f32 1.0, %v695_v2 }
 0x54f   :  { %v268_v4 = vmul.f32 0.5, %v267_v3  ;;  %v445_v3 = vld [vmem:[#allocation2 + $0xa] sm:$0x3] }
 0x551   :  { %v275_v8 = vmul.f32 %v273_v7, %v268_v4 }
 0x5bd   :  { %v278_v5 = vpop.permute.xlu0 %277 }
 0x5be   :  { %v280_v6 = vmul.f32 %v278_v5, %v268_v4 }
 0x5c0   :  { %282 = vrot.lane.b32.xlu2 %v280_v6, %s730_s14 }
 0x61a   :  { %v283_v9 = vpop.permute.xlu2 %282 }
 0x61b   :  { %v285_v10 = vadd.f32 %v283_v9, %v275_v8 }
 0x61d   :  { %696 = vtanh.f32 %v285_v10  ;;  %293 = vrot.lane.b32.xlu2 %v285_v10, %s731_s3 }
 0x623   :  { %v697_v11 = vpop.eup %696 }
 0x624   :  { %288 = vrot.lane.b32.xlu0 %v697_v11, %s729_s13 }
 0x677   :  { %v294_v12 = vpop.permute.xlu2 %293 }
 0x678   :  { %296 = vst.msk [vmem:[#allocation4] sm:$0x3] %vm21_vm0, %v294_v12 }
 0x67f   :  { %v340_v16 = vld [vmem:[#allocation4] sm:$0x3] }
 0x696   :  { %v289_v13 = vpop.permute.xlu0 %288 }
 0x697   :  { %v291_v14 = vmul.f32 %v289_v13, %v268_v4 }
 0x699   :  { %298 = vrot.lane.b32.xlu1 %v291_v14, %s730_s14 }
 0x6a1   :  { %342 = vrot.lane.b32.xlu1 %v340_v16, %s730_s14 }
 0x70b   :  { %v299_v17 = vpop.permute.xlu1 %298 }
 0x70c   :  { %301 = vst.msk [vmem:[#allocation3] sm:$0x3] %vm21_vm0, %v299_v17 }
 0x70d   :  { %664 = vst.msk [vmem:[%s924_s4 + $0x4] sm:$0x3] %vm21_vm0, %v299_v17 }
 0x713   :  { %v306_v18 = vld [vmem:[#allocation3] sm:$0x3]  ;;  %v343_v29 = vpop.permute.xlu1 %342 }
 0x714   :  { %665 = vmatmul.msk.f32.vlgmr.msrb.gmra.mxu1 %vm65_vm1, %v306_v18 }
 0x791   :  { %v331_v20 = vpop.f32.mrf.mxu1 }
 0x792   :  { %v334_v21 = vadd.f32 %v331_v20, %v305_v19 }
 0x794   :  { %698 = vtanh.f32 %v334_v21  ;;  %v335_v23 = vmul.f32 0.5, %v334_v21 }
 0x796   :  { %700 = vtanh.f32 %v335_v23 }
 0x79a   :  { %v699_v22 = vpop.eup %698 }
 0x79b   :  { %347 = vrot.lane.b32.xlu0 %v699_v22, %s729_s13 }
 0x79c   :  { %v701_v24 = vpop.eup %700 }
 0x79d   :  { %v337_v25 = vadd.f32 1.0, %v701_v24 }
 0x79f   :  { %v338_v26 = vmul.f32 0.5, %v337_v25  ;;  %v515_v25 = vld [vmem:[#allocation2 + $0xc] sm:$0x3] }
 0x7a1   :  { %v345_v30 = vmul.f32 %v343_v29, %v338_v26 }
 0x80d   :  { %v348_v27 = vpop.permute.xlu0 %347 }
 0x80e   :  { %v350_v28 = vmul.f32 %v348_v27, %v338_v26 }
 0x810   :  { %352 = vrot.lane.b32.xlu2 %v350_v28, %s730_s14 }
 0x86a   :  { %v353_v31 = vpop.permute.xlu2 %352 }
 0x86b   :  { %v355_v32 = vadd.f32 %v353_v31, %v345_v30 }
 0x86d   :  { %702 = vtanh.f32 %v355_v32  ;;  %363 = vrot.lane.b32.xlu2 %v355_v32, %s731_s3 }
 0x873   :  { %v703_v33 = vpop.eup %702 }
 0x874   :  { %358 = vrot.lane.b32.xlu0 %v703_v33, %s729_s13 }
 0x8c7   :  { %v364_v34 = vpop.permute.xlu2 %363 }
 0x8c8   :  { %366 = vst.msk [vmem:[#allocation4] sm:$0x3] %vm21_vm0, %v364_v34 }
 0x8cf   :  { %v410_v37 = vld [vmem:[#allocation4] sm:$0x3] }
 0x8e6   :  { %v359_v35 = vpop.permute.xlu0 %358 }
 0x8e7   :  { %v361_v36 = vmul.f32 %v359_v35, %v338_v26 }
 0x8e9   :  { %368 = vrot.lane.b32.xlu1 %v361_v36, %s730_s14 }
 0x8f1   :  { %412 = vrot.lane.b32.xlu1 %v410_v37, %s730_s14 }
 0x95b   :  { %v369_v43 = vpop.permute.xlu1 %368 }
 0x95c   :  { %371 = vst.msk [vmem:[#allocation3] sm:$0x3] %vm21_vm0, %v369_v43 }
 0x95d   :  { %666 = vst.msk [vmem:[%s924_s4 + $0x6] sm:$0x3] %vm21_vm0, %v369_v43 }
 0x963   :  { %v376_v44 = vld [vmem:[#allocation3] sm:$0x3]  ;;  %v413_v57 = vpop.permute.xlu1 %412 }
 0x964   :  { %667 = vmatmul.msk.f32.vlgmr.msrb.gmra.mxu2 %vm65_vm1, %v376_v44 }
 0x9e7   :  { %v401_v48 = vpop.f32.mrf.mxu2 }
 0x9e8   :  { %v404_v49 = vadd.f32 %v401_v48, %v375_v47 }
 0x9ea   :  { %704 = vtanh.f32 %v404_v49  ;;  %v405_v51 = vmul.f32 0.5, %v404_v49 }
 0x9ec   :  { %706 = vtanh.f32 %v405_v51 }
 0x9f0   :  { %v705_v50 = vpop.eup %704 }
 0x9f1   :  { %417 = vrot.lane.b32.xlu0 %v705_v50, %s729_s13 }
 0x9f2   :  { %v707_v52 = vpop.eup %706 }
 0x9f3   :  { %v407_v53 = vadd.f32 1.0, %v707_v52 }
 0x9f5   :  { %v408_v54 = vmul.f32 0.5, %v407_v53 }
 0x9f7   :  { %v415_v58 = vmul.f32 %v413_v57, %v408_v54 }
 0xa63   :  { %v418_v55 = vpop.permute.xlu0 %417 }
 0xa64   :  { %v420_v56 = vmul.f32 %v418_v55, %v408_v54 }
 0xa66   :  { %422 = vrot.lane.b32.xlu2 %v420_v56, %s730_s14 }
 0xac0   :  { %v423_v15 = vpop.permute.xlu2 %422 }
 0xac1   :  { %v425_v59 = vadd.f32 %v423_v15, %v415_v58 }
 0xac3   :  { %708 = vtanh.f32 %v425_v59  ;;  %433 = vrot.lane.b32.xlu2 %v425_v59, %s731_s3 }
 0xac9   :  { %v709_v60 = vpop.eup %708 }
 0xaca   :  { %428 = vrot.lane.b32.xlu0 %v709_v60, %s729_s13 }
 0xb1d   :  { %v434_v61 = vpop.permute.xlu2 %433 }
 0xb1e   :  { %436 = vst.msk [vmem:[#allocation4] sm:$0x3] %vm21_vm0, %v434_v61 }
 0xb25   :  { %v480_v0 = vld [vmem:[#allocation4] sm:$0x3] }
 0xb3c   :  { %v429_v62 = vpop.permute.xlu0 %428 }
 0xb3d   :  { %v431_v63 = vmul.f32 %v429_v62, %v408_v54 }
 0xb3f   :  { %438 = vrot.lane.b32.xlu1 %v431_v63, %s730_s14 }
 0xb47   :  { %482 = vrot.lane.b32.xlu1 %v480_v0, %s730_s14 }
 0xbb1   :  { %v439_v1 = vpop.permute.xlu1 %438 }
 0xbb2   :  { %441 = vst.msk [vmem:[#allocation3] sm:$0x3] %vm21_vm0, %v439_v1 }
 0xbb3   :  { %668 = vst.msk [vmem:[%s924_s4 + $0x8] sm:$0x3] %vm21_vm0, %v439_v1 }
 0xbb9   :  { %v446_v2 = vld [vmem:[#allocation3] sm:$0x3]  ;;  %v483_v13 = vpop.permute.xlu1 %482 }
 0xbba   :  { %669 = vmatmul.msk.f32.vlgmr.msrb.gmra.mxu3 %vm65_vm1, %v446_v2 }
 0xc3d   :  { %v471_v4 = vpop.f32.mrf.mxu3 }
 0xc3e   :  { %v474_v5 = vadd.f32 %v471_v4, %v445_v3 }
 0xc40   :  { %710 = vtanh.f32 %v474_v5  ;;  %v475_v7 = vmul.f32 0.5, %v474_v5 }
 0xc42   :  { %712 = vtanh.f32 %v475_v7 }
 0xc46   :  { %v711_v6 = vpop.eup %710 }
 0xc47   :  { %487 = vrot.lane.b32.xlu0 %v711_v6, %s729_s13 }
 0xc48   :  { %v713_v8 = vpop.eup %712 }
 0xc49   :  { %v477_v9 = vadd.f32 1.0, %v713_v8 }
 0xc4b   :  { %v478_v10 = vmul.f32 0.5, %v477_v9 }
 0xc4d   :  { %v485_v14 = vmul.f32 %v483_v13, %v478_v10 }
 0xcb9   :  { %v488_v11 = vpop.permute.xlu0 %487 }
 0xcba   :  { %v490_v12 = vmul.f32 %v488_v11, %v478_v10 }
 0xcbc   :  { %492 = vrot.lane.b32.xlu2 %v490_v12, %s730_s14 }
 0xd16   :  { %v493_v16 = vpop.permute.xlu2 %492 }
 0xd17   :  { %v495_v17 = vadd.f32 %v493_v16, %v485_v14 }
 0xd19   :  { %714 = vtanh.f32 %v495_v17  ;;  %503 = vrot.lane.b32.xlu2 %v495_v17, %s731_s3 }
 0xd1f   :  { %v715_v18 = vpop.eup %714 }
 0xd20   :  { %498 = vrot.lane.b32.xlu0 %v715_v18, %s729_s13 }
 0xd73   :  { %v504_v19 = vpop.permute.xlu2 %503 }
 0xd74   :  { %506 = vst.msk [vmem:[#allocation4] sm:$0x3] %vm21_vm0, %v504_v19 }
 0xd7b   :  { %v550_v22 = vld [vmem:[#allocation4] sm:$0x3] }
 0xd92   :  { %v499_v20 = vpop.permute.xlu0 %498 }
 0xd93   :  { %v501_v21 = vmul.f32 %v499_v20, %v478_v10 }
 0xd95   :  { %508 = vrot.lane.b32.xlu1 %v501_v21, %s730_s14 }
 0xd9d   :  { %552 = vrot.lane.b32.xlu1 %v550_v22, %s730_s14 }
 0xe07   :  { %v509_v23 = vpop.permute.xlu1 %508 }
 0xe08   :  { %511 = vst.msk [vmem:[#allocation3] sm:$0x3] %vm21_vm0, %v509_v23 }
 0xe09   :  { %670 = vst.msk [vmem:[%s924_s4 + $0xa] sm:$0x3] %vm21_vm0, %v509_v23 }
 0xe0f   :  { %v516_v24 = vld [vmem:[#allocation3] sm:$0x3]  ;;  %v553_v35 = vpop.permute.xlu1 %552 }
 0xe10   :  { %671 = vmatmul.msk.f32.vlgmr.msrb.gmra.mxu0 %vm65_vm1, %v516_v24 }
 0xe8d   :  { %v541_v26 = vpop.f32.mrf.mxu0 }
 0xe8e   :  { %v544_v27 = vadd.f32 %v541_v26, %v515_v25 }
 0xe90   :  { %716 = vtanh.f32 %v544_v27  ;;  %v545_v29 = vmul.f32 0.5, %v544_v27 }
 0xe92   :  { %718 = vtanh.f32 %v545_v29 }
 0xe96   :  { %v717_v28 = vpop.eup %716 }
 0xe97   :  { %557 = vrot.lane.b32.xlu0 %v717_v28, %s729_s13 }
 0xe98   :  { %v719_v30 = vpop.eup %718 }
 0xe99   :  { %v547_v31 = vadd.f32 1.0, %v719_v30 }
 0xe9b   :  { %v548_v32 = vmul.f32 0.5, %v547_v31 }
 0xe9d   :  { %v555_v36 = vmul.f32 %v553_v35, %v548_v32 }
 0xf09   :  { %v558_v33 = vpop.permute.xlu0 %557 }
 0xf0a   :  { %v560_v34 = vmul.f32 %v558_v33, %v548_v32 }
 0xf0c   :  { %562 = vrot.lane.b32.xlu2 %v560_v34, %s730_s14 }
 0xf66   :  { %v563_v37 = vpop.permute.xlu2 %562 }
 0xf67   :  { %v565_v38 = vadd.f32 %v563_v37, %v555_v36 }
 0xf69   :  { %720 = vtanh.f32 %v565_v38  ;;  %573 = vrot.lane.b32.xlu2 %v565_v38, %s731_s3 }
 0xf6f   :  { %v721_v39 = vpop.eup %720 }
 0xf70   :  { %568 = vrot.lane.b32.xlu0 %v721_v39, %s729_s13 }
 0xfc3   :  { %v574_v40 = vpop.permute.xlu2 %573 }
 0xfc4   :  { %576 = vst.msk [vmem:[#allocation4] sm:$0x3] %vm21_vm0, %v574_v40 }
 0xfcb   :  { %v620_v43 = vld [vmem:[#allocation4] sm:$0x3] }
 0xfe2   :  { %v569_v41 = vpop.permute.xlu0 %568 }
 0xfe3   :  { %v571_v42 = vmul.f32 %v569_v41, %v548_v32 }
 0xfe5   :  { %578 = vrot.lane.b32.xlu1 %v571_v42, %s730_s14 }
 0xfed   :  { %622 = vrot.lane.b32.xlu1 %v620_v43, %s730_s14 }
0x1057   :  { %v579_v44 = vpop.permute.xlu1 %578 }
0x1058   :  { %581 = vst.msk [vmem:[#allocation3] sm:$0x3] %vm21_vm0, %v579_v44 }
0x1059   :  { %672 = vst.msk [vmem:[%s924_s4 + $0xc] sm:$0x3] %vm21_vm0, %v579_v44 }
0x105f   :  { %v586_v45 = vld [vmem:[#allocation3] sm:$0x3]  ;;  %v623_v56 = vpop.permute.xlu1 %622 }
0x1060   :  { %673 = vmatmul.msk.f32.vlgmr.msra.gmra.mxu1 %vm65_vm1, %v586_v45 }
0x10dd   :  { %v611_v47 = vpop.f32.mrf.mxu1 }
0x10de   :  { %v614_v48 = vadd.f32 %v611_v47, %v585_v46 }
0x10e0   :  { %722 = vtanh.f32 %v614_v48  ;;  %v615_v50 = vmul.f32 0.5, %v614_v48 }
0x10e2   :  { %724 = vtanh.f32 %v615_v50 }
0x10e6   :  { %v723_v49 = vpop.eup %722 }
0x10e7   :  { %627 = vrot.lane.b32.xlu0 %v723_v49, %s729_s13 }
0x10e8   :  { %v725_v51 = vpop.eup %724 }
0x10e9   :  { %v617_v52 = vadd.f32 1.0, %v725_v51 }
0x10eb   :  { %v618_v53 = vmul.f32 0.5, %v617_v52 }
0x10ed   :  { %v625_v57 = vmul.f32 %v623_v56, %v618_v53 }
0x1159   :  { %v628_v54 = vpop.permute.xlu0 %627 }
0x115a   :  { %v630_v55 = vmul.f32 %v628_v54, %v618_v53 }
0x115c   :  { %632 = vrot.lane.b32.xlu2 %v630_v55, %s730_s14 }
0x11b6   :  { %v633_v58 = vpop.permute.xlu2 %632 }
0x11b7   :  { %v635_v15 = vadd.f32 %v633_v58, %v625_v57 }
0x11b9   :  { %726 = vtanh.f32 %v635_v15  ;;  %643 = vrot.lane.b32.xlu1 %v635_v15, %s731_s3 }
0x11bf   :  { %v727_v59 = vpop.eup %726 }
0x11c0   :  { %638 = vrot.lane.b32.xlu0 %v727_v59, %s729_s13 }
0x122b   :  { %v644_v60 = vpop.permute.xlu1 %643 }
0x122c   :  { %646 = vst.msk [vmem:[#allocation4] sm:$0x3] %vm21_vm0, %v644_v60 }
0x1232   :  { %v639_v61 = vpop.permute.xlu0 %638 }
0x1233   :  { %v641_v62 = vmul.f32 %v639_v61, %v618_v53 }
0x1235   :  { %648 = vrot.lane.b32.xlu2 %v641_v62, %s730_s14 }
0x128f   :  { %v649_v63 = vpop.permute.xlu2 %648 }
0x1290   :  { %651 = vst.msk [vmem:[#allocation3] sm:$0x3] %vm21_vm0, %v649_v63 }
0x1291   :  { %674 = vst.msk [vmem:[%s924_s4 + $0xe] sm:$0x3] %vm21_vm0, %v649_v63 }

</bundles_post_ra>
